<compile_context>
chip_gen: v7x
topology: tpu7x:2x2x1
jax: 0.10.0
libtpu: 0.0.40
codegen_flags: <defaults>
</compile_context>

<pallas_src>
import functools
import math

import jax
import jax.numpy as jnp
from jax import lax
from jax.experimental import pallas as pl
from jax.experimental.pallas import tpu as pltpu


# ---------------------------------------------------------------------------
# small math helpers
# ---------------------------------------------------------------------------
def _erf(x, recip):
    # Abramowitz & Stegun 7.1.26 polynomial erf (|err| < 1.5e-7), exp-only.
    a1, a2, a3, a4, a5 = 0.254829592, -0.284496736, 1.421413741, -1.453152027, 1.061405429
    p = 0.3275911
    sgn = jnp.where(x >= 0.0, 1.0, -1.0)
    ax = jnp.abs(x)
    t = recip(1.0 + p * ax)
    poly = ((((a5 * t + a4) * t + a3) * t + a2) * t + a1) * t
    return sgn * (1.0 - poly * jnp.exp(-ax * ax))


def _gelu(x, recip):
    # exact (erf-based) GELU = torch.nn.functional.gelu default
    return 0.5 * x * (1.0 + _erf(x * (1.0 / math.sqrt(2.0)), recip))


def _leaky_relu(x):
    return jnp.where(x >= 0.0, x, 0.01 * x)


# ---------------------------------------------------------------------------
# shared restructured math: works on VMEM Refs (in-kernel) AND on jnp arrays
# (pure-JAX check) because every access below is static indexing.
# ---------------------------------------------------------------------------
def _app2_compute(z0, in_w, in_b, blk_w, blk_b, head_mask_s, head_expand,
                  swap_sel, out_w, out_b, *, B, H, recip):
    f32, bf16 = jnp.float32, jnp.bfloat16

    def mm(x, w):  # bf16 operands, f32 MXU accumulation
        return jnp.dot(x.astype(bf16), w, preferred_element_type=f32)

    row = lax.broadcasted_iota(jnp.int32, (2 * B, H), 0)
    is_tok0 = row < B                                  # rows [0:B] = token 0 (emb1)

    # ---- input stage: aprojector + both aux MLPs as stacked block-diag matmuls
    W0 = in_w[0:768 + 16, :]                           # [aproj_w ; aux_w1 block-diag]
    w2_bd = in_w[768 + 16:768 + 16 + H, :]             # aux linear2 block-diag
    aproj_b = in_b[:, 0:H]
    aux_b1 = in_b[:, H:2 * H]
    aux_b2 = in_b[:, 2 * H:3 * H]

    t = mm(z0[...], W0) + jnp.where(is_tok0, aproj_b, aux_b1)       # (2B, H)
    aux_full = mm(_gelu(t, recip), w2_bd) + aux_b2                  # (2B, H)
    x = jnp.where(is_tok0, t, aux_full)                             # stacked tokens

    hm = head_mask_s[...]                               # (H, 8) scale folded in
    he = head_expand[...]                               # (8, H) 0/1 indicator
    P = swap_sel[...]                                   # (2B, 2B) token-swap permutation

    inv_n = 1.0 / (2 * B * H)

    def full_ln(v):
        # F.layer_norm(x, x.shape): one-pass stats over ALL elements (incl. batch)
        s = jnp.sum(v)
        sq = jnp.sum(v * v)
        mean = s * inv_n
        var = sq * inv_n - mean * mean
        return (v - mean) * lax.rsqrt(var + 1e-5)

    for i in range(3):
        wqkv = blk_w[i, :, 0:3 * H]
        fw1 = blk_w[i, :, 3 * H:4 * H]
        fw2 = blk_w[i, :, 4 * H:5 * H]
        bqkv = blk_b[i, :, 0:3 * H]
        fb1 = blk_b[i, :, 3 * H:4 * H]
        fb2 = blk_b[i, :, 4 * H:5 * H]

        # ---- multi-head mixer over the 2 tokens (single fused QKV matmul) ----
        qkv = mm(x, wqkv) + bqkv                        # (2B, 3H)
        q = qkv[:, 0:H]
        k = qkv[:, H:2 * H]
        v = qkv[:, 2 * H:3 * H]
        kv_sw = jnp.dot(P, qkv[:, H:3 * H], preferred_element_type=f32)
        k_sw = kv_sw[:, 0:H]                            # other token's K (same batch row)
        v_sw = kv_sw[:, H:2 * H]

        s_self = jnp.dot(q * k, hm, preferred_element_type=f32)      # (2B, 8)
        s_cross = jnp.dot(q * k_sw, hm, preferred_element_type=f32)  # (2B, 8)
        a_self = recip(1.0 + jnp.exp(s_cross - s_self))  # 2-way softmax == sigmoid
        w_self = jnp.dot(a_self, he, preferred_element_type=f32)     # (2B, H)
        mix = v_sw + w_self * (v - v_sw)                 # a_self*v + (1-a_self)*v_sw

        x = full_ln(x + mix)

        # ---- FFN (weights shared by both tokens -> one stacked matmul each) ----
        h = _leaky_relu(mm(x, fw1) + fb1)               # nn.Dropout = inference identity
        x = full_ln(x + mm(h, fw2) + fb2)

    # bprojector, lane-padded to 128; token-0 rows are sliced out in the wrapper
    return mm(x, out_w[...]) + out_b[...]               # (2B, 128)


# ---------------------------------------------------------------------------
# Pallas kernel
# ---------------------------------------------------------------------------
def _app2_kernel(z0_ref, in_w_ref, in_b_ref, blk_w_ref, blk_b_ref,
                 hm_ref, he_ref, swap_ref, out_w_ref, out_b_ref, o_ref, *, B, H):
    o_ref[...] = _app2_compute(
        z0_ref, in_w_ref, in_b_ref, blk_w_ref, blk_b_ref,
        hm_ref, he_ref, swap_ref, out_w_ref, out_b_ref,
        B=B, H=H, recip=lambda v: pl.reciprocal(v, approx=True))


def _build_inputs(pooler, aggro, off):
    B = pooler.shape[0]
    # stacked input: rows [0:B] = [pooler | 0], rows [B:2B] = [0 | aggro | off | 0-pad]
    z0 = (jnp.zeros((2 * B, 768 + 16), jnp.float32)
          .at[0:B, 0:768].set(pooler)
          .at[B:2 * B, 768:774].set(aggro)
          .at[B:2 * B, 774:780].set(off))
    # permutation that swaps the two token groups (row i <-> row i +- B)
    swap_sel = jax.nn.one_hot((jnp.arange(2 * B) + B) % (2 * B), 2 * B,
                              dtype=jnp.float32)
    return z0, swap_sel


def app2_forward(pooler, aggro, off, packed, ax_dim):
    B = pooler.shape[0]
    H = 2 * ax_dim
    z0, swap_sel = _build_inputs(pooler, aggro, off)
    inputs = (z0, packed["in_w"], packed["in_b"], packed["blk_w"], packed["blk_b"],
              packed["head_mask_s"], packed["head_expand"], swap_sel,
              packed["out_w"], packed["out_b"])
    out = pl.pallas_call(
        functools.partial(_app2_kernel, B=B, H=H),
        out_shape=jax.ShapeDtypeStruct((2 * B, 128), jnp.float32),
        in_specs=[pl.BlockSpec(memory_space=pltpu.MemorySpace.VMEM)] * len(inputs),
        out_specs=pl.BlockSpec(memory_space=pltpu.MemorySpace.VMEM),
    )(*inputs)
    return out[0:B, 0:6]


# ---------------------------------------------------------------------------
# parameter init (shapes follow App2.__init__; weights stored (in, out)) + packing
# ---------------------------------------------------------------------------
def init_params(key, ax_dim, hidden_dim):
    H = 2 * ax_dim
    keys = jax.random.split(key, 14)

    def w(k, shape, fan_in):
        return jax.random.uniform(k, shape, jnp.float32, -1.0, 1.0) / math.sqrt(fan_in)

    return {
        "aux_w1": w(keys[0], (2, 6, ax_dim), 6),              # aggro_mlp / aoff_mlp linear1
        "aux_b1": w(keys[1], (2, ax_dim), 6),
        "aux_w2": w(keys[2], (2, ax_dim, ax_dim), ax_dim),    # linear2
        "aux_b2": w(keys[3], (2, ax_dim), ax_dim),
        "aproj_w": w(keys[4], (768, H), 768),                 # aprojector
        "aproj_b": w(keys[5], (1, H), 768),
        "mix_w": w(keys[6], (3, 3, H, H), H),                 # amixer{1,2,3} x (Wq,Wk,Wv)
        "mix_b": w(keys[7], (3, 3, H), H),
        "ffn_w1": w(keys[8], (3, H, hidden_dim), H),          # affn{1,2,3} first linear
        "ffn_b1": w(keys[9], (3, hidden_dim), H),
        "ffn_w2": w(keys[10], (3, hidden_dim, hidden_dim), hidden_dim),
        "ffn_b2": w(keys[11], (3, hidden_dim), hidden_dim),
        "bproj_w": w(keys[12], (H, 6), H),                    # bprojector
        "bproj_b": w(keys[13], (1, 6), H),
    }


def pack_params(params, ax_dim):
    ax = ax_dim
    H = 2 * ax
    assert H % 128 == 0, "2*ax_dim must be a multiple of 128 for lane-aligned packing"
    assert params["ffn_w1"].shape[2] == H and params["ffn_w2"].shape[1] == H, \
        "hidden_dim must equal 2*ax_dim (required by the residual in App2)"
    f32, bf16 = jnp.float32, jnp.bfloat16

    # input-stage weights: [aprojector ; block-diag aux linear1 (12->16 rows) ; block-diag aux linear2]
    aux_w1_bd = (jnp.zeros((16, H), f32)
                 .at[0:6, 0:ax].set(params["aux_w1"][0])
                 .at[6:12, ax:H].set(params["aux_w1"][1]))
    aux_w2_bd = (jnp.zeros((H, H), f32)
                 .at[0:ax, 0:ax].set(params["aux_w2"][0])
                 .at[ax:H, ax:H].set(params["aux_w2"][1]))
    in_w = jnp.concatenate([params["aproj_w"], aux_w1_bd, aux_w2_bd], axis=0).astype(bf16)
    in_b = jnp.concatenate([
        params["aproj_b"].reshape(1, H),
        jnp.concatenate([params["aux_b1"][0], params["aux_b1"][1]]).reshape(1, H),
        jnp.concatenate([params["aux_b2"][0], params["aux_b2"][1]]).reshape(1, H),
    ], axis=1)

    # per-block packed weights: [Wq | Wk | Wv | ffn_w1 | ffn_w2] on the lane axis
    blk_w = jnp.concatenate([params["mix_w"][:, 0], params["mix_w"][:, 1],
                             params["mix_w"][:, 2], params["ffn_w1"],
                             params["ffn_w2"]], axis=2).astype(bf16)      # (3, H, 5H)
    blk_b = jnp.concatenate([params["mix_b"][:, 0], params["mix_b"][:, 1],
                             params["mix_b"][:, 2], params["ffn_b1"],
                             params["ffn_b2"]], axis=1)[:, None, :]       # (3, 1, 5H)

    # lane-padded output projector (6 -> 128 lanes; sliced back in the wrapper)
    out_w = jnp.zeros((H, 128), f32).at[:, 0:6].set(params["bproj_w"]).astype(bf16)
    out_b = jnp.zeros((1, 128), f32).at[:, 0:6].set(params["bproj_b"].reshape(1, 6))

    # per-head indicator matrices; 1/sqrt(head_dim) folded into the score-side mask
    scale = 1.0 / math.sqrt(ax // 8)
    base = jnp.repeat(jnp.eye(8, dtype=f32), H // 8, axis=0)              # (H, 8)
    return {
        "in_w": in_w, "in_b": in_b, "blk_w": blk_w, "blk_b": blk_b,
        "head_mask_s": base * scale, "head_expand": base.T,
        "out_w": out_w, "out_b": out_b,
    }


# ---------------------------------------------------------------------------
# op-for-op f32 port of the PyTorch module (loose semantic reference)
# ---------------------------------------------------------------------------
def _app2_reference(pooler, aggro, off, params, ax_dim):
    recip = lambda v: 1.0 / v
    scale = 1.0 / math.sqrt(ax_dim // 8)

    def lin(x, w, b):
        return jnp.dot(x, w, preferred_element_type=jnp.float32) + b

    emb1 = lin(pooler, params["aproj_w"], params["aproj_b"])
    emb2 = lin(_gelu(lin(aggro, params["aux_w1"][0], params["aux_b1"][0]), recip),
               params["aux_w2"][0], params["aux_b2"][0])
    emb3 = lin(_gelu(lin(off, params["aux_w1"][1], params["aux_b1"][1]), recip),
               params["aux_w2"][1], params["aux_b2"][1])
    aux = jnp.concatenate([emb2, emb3], axis=1)
    x = jnp.stack([emb1, aux], axis=1)                                   # (B, 2, H)

    def full_ln(v, eps=1e-5):
        mean = jnp.mean(v)
        var = jnp.mean((v - mean) ** 2)
        return (v - mean) * lax.rsqrt(var + eps)

    def mixer(v, wq, bq, wk, bk, wv, bv):
        Bn, N, Hn = v.shape
        hd = Hn // 8
        q = lin(v, wq, bq).reshape(Bn, N, 8, hd).transpose(0, 2, 1, 3)
        k = lin(v, wk, bk).reshape(Bn, N, 8, hd).transpose(0, 2, 1, 3)
        vv = lin(v, wv, bv).reshape(Bn, N, 8, hd).transpose(0, 2, 1, 3)
        sc = jnp.einsum("bhid,bhjd->bhij", q, k) * scale
        a = jax.nn.softmax(sc, axis=-1)
        o = jnp.einsum("bhij,bhjd->bhid", a, vv)
        return o.transpose(0, 2, 1, 3).reshape(Bn, N, Hn)

    def ffn(v, w1, b1, w2, b2):
        h = lin(v, w1, b1)
        h = jnp.where(h >= 0.0, h, 0.01 * h)
        return lin(h, w2, b2)

    for i in range(3):
        x = full_ln(x + mixer(x, params["mix_w"][i, 0], params["mix_b"][i, 0],
                              params["mix_w"][i, 1], params["mix_b"][i, 1],
                              params["mix_w"][i, 2], params["mix_b"][i, 2]))
        x = full_ln(x + ffn(x, params["ffn_w1"][i], params["ffn_b1"][i],
                            params["ffn_w2"][i], params["ffn_b2"][i]))
    return lin(x[:, 0, :], params["bproj_w"], params["bproj_b"])          # (B, 6)


if __name__ == "__main__":
    AX_DIM = 64                  # small-shape version of the default ax_dim=128
    HIDDEN = 2 * AX_DIM          # hidden_dim must equal 2*ax_dim (as in the 128/256 default)
    B = 2
    H = 2 * AX_DIM

    key = jax.random.PRNGKey(0)
    k_p, k_pool, k_ag, k_off = jax.random.split(key, 4)
    params = init_params(k_p, AX_DIM, HIDDEN)

    pooler = jax.random.normal(k_pool, (B, 768), jnp.float32)   # stand-in for LM(X)['pooler_output']
    aggro = jax.random.normal(k_ag, (B, 6), jnp.float32)
    off = jax.random.normal(k_off, (B, 6), jnp.float32)
    # `y` is accepted by App2.forward but never used (only logits are returned).

    packed = pack_params(params, AX_DIM)
    logits = app2_forward(pooler, aggro, off, packed, AX_DIM)
    logits = jax.block_until_ready(logits)
    assert logits.shape == (B, 6)

    # tight check: identical restructured math run as plain JAX (only approx-recip /
    # accumulation-order differences vs the kernel)
    z0, swap_sel = _build_inputs(pooler, aggro, off)
    same_math = _app2_compute(
        z0, packed["in_w"], packed["in_b"], packed["blk_w"], packed["blk_b"],
        packed["head_mask_s"], packed["head_expand"], swap_sel,
        packed["out_w"], packed["out_b"],
        B=B, H=H, recip=lambda v: 1.0 / v)[0:B, 0:6]
    assert jnp.allclose(logits, same_math, atol=1e-2, rtol=1e-2)

    # loose check: op-for-op f32 port of the PyTorch module (bf16 operand drift allowed)
    with jax.default_matmul_precision("highest"):
        faithful = _app2_reference(pooler, aggro, off, params, AX_DIM)
    assert jnp.allclose(logits, faithful, atol=3e-2, rtol=3e-2)

    print("KERNEL_OK")
</pallas_src>

<mosaic_0001>
module attributes {stable_mosaic.version = 11 : i64} {
  func.func @_app2_kernel(%arg0: memref<4x784xf32, #tpu.memory_space<vmem>>, %arg1: memref<912x128xbf16, #tpu.memory_space<vmem>>, %arg2: memref<1x384xf32, #tpu.memory_space<vmem>>, %arg3: memref<3x128x640xbf16, #tpu.memory_space<vmem>>, %arg4: memref<3x1x640xf32, #tpu.memory_space<vmem>>, %arg5: memref<128x8xf32, #tpu.memory_space<vmem>>, %arg6: memref<8x128xf32, #tpu.memory_space<vmem>>, %arg7: memref<4x4xf32, #tpu.memory_space<vmem>>, %arg8: memref<128x128xbf16, #tpu.memory_space<vmem>>, %arg9: memref<1x128xf32, #tpu.memory_space<vmem>>, %arg10: memref<4x128xf32, #tpu.memory_space<vmem>>) attributes {dimension_semantics = [], scalar_prefetch = 0 : i64, scratch_operands = 0 : i64, tpu.core_type = #tpu.core_type<tc>} {
    %0 = tpu.iota {dimensions = array<i32: 0>} : vector<4x128xi32>
    %c2_i32 = arith.constant 2 : i32
    %1 = vector.broadcast %c2_i32 : i32 to vector<4x128xi32>
    %2 = arith.cmpi slt, %0, %1 : vector<4x128xi32>
    %c0 = arith.constant 0 : index
    %c0_0 = arith.constant 0 : index
    %3 = vector.load %arg1[%c0, %c0_0] : memref<912x128xbf16, #tpu.memory_space<vmem>>, vector<784x128xbf16>
    %c784 = arith.constant 784 : index
    %c0_1 = arith.constant 0 : index
    %4 = vector.load %arg1[%c784, %c0_1] : memref<912x128xbf16, #tpu.memory_space<vmem>>, vector<128x128xbf16>
    %c0_2 = arith.constant 0 : index
    %c0_3 = arith.constant 0 : index
    %5 = vector.load %arg2[%c0_2, %c0_3] : memref<1x384xf32, #tpu.memory_space<vmem>>, vector<1x128xf32>
    %c0_4 = arith.constant 0 : index
    %c128 = arith.constant 128 : index
    %6 = vector.load %arg2[%c0_4, %c128] : memref<1x384xf32, #tpu.memory_space<vmem>>, vector<1x128xf32>
    %c0_5 = arith.constant 0 : index
    %c256 = arith.constant 256 : index
    %7 = vector.load %arg2[%c0_5, %c256] : memref<1x384xf32, #tpu.memory_space<vmem>>, vector<1x128xf32>
    %c0_6 = arith.constant 0 : index
    %c0_7 = arith.constant 0 : index
    %8 = vector.load %arg0[%c0_6, %c0_7] : memref<4x784xf32, #tpu.memory_space<vmem>>, vector<4x784xf32>
    %9 = arith.truncf %8 : vector<4x784xf32> to vector<4x784xbf16>
    %cst = arith.constant dense<0.000000e+00> : vector<4x128xf32>
    %10 = tpu.matmul %9, %3, %cst {dimension_numbers = #tpu.dot_dimension_numbers<[1], [0], [0], [1], [0, 0, 1, 1], [], []>} : vector<4x784xbf16>, vector<784x128xbf16>, vector<4x128xf32> -> vector<4x128xf32>
    %11 = vector.shape_cast %5 : vector<1x128xf32> to vector<1x128xf32>
    %12 = vector.broadcast %11 : vector<1x128xf32> to vector<4x128xf32>
    %13 = vector.shape_cast %6 : vector<1x128xf32> to vector<1x128xf32>
    %14 = vector.broadcast %13 : vector<1x128xf32> to vector<4x128xf32>
    %15 = arith.select %2, %12, %14 : vector<4x128xi1>, vector<4x128xf32>
    %16 = arith.addf %10, %15 : vector<4x128xf32>
    %cst_8 = arith.constant 5.000000e-01 : f32
    %17 = vector.broadcast %cst_8 : f32 to vector<4x128xf32>
    %18 = arith.mulf %17, %16 : vector<4x128xf32>
    %cst_9 = arith.constant 0.707106769 : f32
    %19 = vector.broadcast %cst_9 : f32 to vector<4x128xf32>
    %20 = arith.mulf %16, %19 : vector<4x128xf32>
    %cst_10 = arith.constant 0.000000e+00 : f32
    %21 = vector.broadcast %cst_10 : f32 to vector<4x128xf32>
    %22 = arith.cmpf oge, %20, %21 : vector<4x128xf32>
    %cst_11 = arith.constant 1.000000e+00 : f32
    %cst_12 = arith.constant -1.000000e+00 : f32
    %23 = vector.broadcast %cst_11 : f32 to vector<4x128xf32>
    %24 = vector.broadcast %cst_12 : f32 to vector<4x128xf32>
    %25 = arith.select %22, %23, %24 : vector<4x128xi1>, vector<4x128xf32>
    %26 = math.absf %20 : vector<4x128xf32>
    %cst_13 = arith.constant 0.327591091 : f32
    %27 = vector.broadcast %cst_13 : f32 to vector<4x128xf32>
    %28 = arith.mulf %27, %26 : vector<4x128xf32>
    %cst_14 = arith.constant 1.000000e+00 : f32
    %29 = vector.broadcast %cst_14 : f32 to vector<4x128xf32>
    %30 = arith.addf %29, %28 : vector<4x128xf32>
    %31 = tpu.reciprocal %30 {approx = true} : vector<4x128xf32> -> vector<4x128xf32>
    %cst_15 = arith.constant 1.06140542 : f32
    %32 = vector.broadcast %cst_15 : f32 to vector<4x128xf32>
    %33 = arith.mulf %32, %31 : vector<4x128xf32>
    %cst_16 = arith.constant -1.45315206 : f32
    %34 = vector.broadcast %cst_16 : f32 to vector<4x128xf32>
    %35 = arith.addf %33, %34 : vector<4x128xf32>
    %36 = arith.mulf %35, %31 : vector<4x128xf32>
    %cst_17 = arith.constant 1.42141378 : f32
    %37 = vector.broadcast %cst_17 : f32 to vector<4x128xf32>
    %38 = arith.addf %36, %37 : vector<4x128xf32>
    %39 = arith.mulf %38, %31 : vector<4x128xf32>
    %cst_18 = arith.constant -0.284496725 : f32
    %40 = vector.broadcast %cst_18 : f32 to vector<4x128xf32>
    %41 = arith.addf %39, %40 : vector<4x128xf32>
    %42 = arith.mulf %41, %31 : vector<4x128xf32>
    %cst_19 = arith.constant 0.254829586 : f32
    %43 = vector.broadcast %cst_19 : f32 to vector<4x128xf32>
    %44 = arith.addf %42, %43 : vector<4x128xf32>
    %45 = arith.mulf %44, %31 : vector<4x128xf32>
    %cst_20 = arith.constant 0.000000e+00 : f32
    %46 = vector.broadcast %cst_20 : f32 to vector<4x128xf32>
    %47 = arith.subf %46, %26 : vector<4x128xf32>
    %48 = arith.mulf %47, %26 : vector<4x128xf32>
    %49 = math.exp %48 : vector<4x128xf32>
    %50 = arith.mulf %45, %49 : vector<4x128xf32>
    %cst_21 = arith.constant 1.000000e+00 : f32
    %51 = vector.broadcast %cst_21 : f32 to vector<4x128xf32>
    %52 = arith.subf %51, %50 : vector<4x128xf32>
    %53 = arith.mulf %25, %52 : vector<4x128xf32>
    %cst_22 = arith.constant 1.000000e+00 : f32
    %54 = vector.broadcast %cst_22 : f32 to vector<4x128xf32>
    %55 = arith.addf %54, %53 : vector<4x128xf32>
    %56 = arith.mulf %18, %55 : vector<4x128xf32>
    %57 = arith.truncf %56 : vector<4x128xf32> to vector<4x128xbf16>
    %cst_23 = arith.constant dense<0.000000e+00> : vector<4x128xf32>
    %58 = tpu.matmul %57, %4, %cst_23 {dimension_numbers = #tpu.dot_dimension_numbers<[1], [0], [0], [1], [0, 0, 1, 1], [], []>} : vector<4x128xbf16>, vector<128x128xbf16>, vector<4x128xf32> -> vector<4x128xf32>
    %59 = vector.broadcast %7 : vector<1x128xf32> to vector<4x128xf32>
    %60 = arith.addf %58, %59 : vector<4x128xf32>
    %61 = arith.select %2, %16, %60 : vector<4x128xi1>, vector<4x128xf32>
    %c0_24 = arith.constant 0 : index
    %c0_25 = arith.constant 0 : index
    %62 = vector.load %arg5[%c0_24, %c0_25] : memref<128x8xf32, #tpu.memory_space<vmem>>, vector<128x8xf32>
    %c0_26 = arith.constant 0 : index
    %c0_27 = arith.constant 0 : index
    %63 = vector.load %arg6[%c0_26, %c0_27] : memref<8x128xf32, #tpu.memory_space<vmem>>, vector<8x128xf32>
    %c0_28 = arith.constant 0 : index
    %c0_29 = arith.constant 0 : index
    %64 = vector.load %arg7[%c0_28, %c0_29] : memref<4x4xf32, #tpu.memory_space<vmem>>, vector<4x4xf32>
    %c0_30 = arith.constant 0 : index
    %c0_31 = arith.constant 0 : index
    %c0_32 = arith.constant 0 : index
    %65 = vector.load %arg3[%c0_30, %c0_31, %c0_32] : memref<3x128x640xbf16, #tpu.memory_space<vmem>>, vector<1x128x384xbf16>
    %66 = vector.shape_cast %65 : vector<1x128x384xbf16> to vector<128x384xbf16>
    %c0_33 = arith.constant 0 : index
    %c0_34 = arith.constant 0 : index
    %c384 = arith.constant 384 : index
    %67 = vector.load %arg3[%c0_33, %c0_34, %c384] : memref<3x128x640xbf16, #tpu.memory_space<vmem>>, vector<1x128x128xbf16>
    %68 = vector.shape_cast %67 : vector<1x128x128xbf16> to vector<128x128xbf16>
    %c0_35 = arith.constant 0 : index
    %c0_36 = arith.constant 0 : index
    %c512 = arith.constant 512 : index
    %69 = vector.load %arg3[%c0_35, %c0_36, %c512] : memref<3x128x640xbf16, #tpu.memory_space<vmem>>, vector<1x128x128xbf16>
    %70 = vector.shape_cast %69 : vector<1x128x128xbf16> to vector<128x128xbf16>
    %c0_37 = arith.constant 0 : index
    %c0_38 = arith.constant 0 : index
    %c0_39 = arith.constant 0 : index
    %71 = vector.load %arg4[%c0_37, %c0_38, %c0_39] : memref<3x1x640xf32, #tpu.memory_space<vmem>>, vector<1x1x384xf32>
    %72 = vector.shape_cast %71 : vector<1x1x384xf32> to vector<1x384xf32>
    %c0_40 = arith.constant 0 : index
    %c0_41 = arith.constant 0 : index
    %c384_42 = arith.constant 384 : index
    %73 = vector.load %arg4[%c0_40, %c0_41, %c384_42] : memref<3x1x640xf32, #tpu.memory_space<vmem>>, vector<1x1x128xf32>
    %74 = vector.shape_cast %73 : vector<1x1x128xf32> to vector<1x128xf32>
    %c0_43 = arith.constant 0 : index
    %c0_44 = arith.constant 0 : index
    %c512_45 = arith.constant 512 : index
    %75 = vector.load %arg4[%c0_43, %c0_44, %c512_45] : memref<3x1x640xf32, #tpu.memory_space<vmem>>, vector<1x1x128xf32>
    %76 = vector.shape_cast %75 : vector<1x1x128xf32> to vector<1x128xf32>
    %77 = arith.truncf %61 : vector<4x128xf32> to vector<4x128xbf16>
    %cst_46 = arith.constant dense<0.000000e+00> : vector<4x384xf32>
    %78 = tpu.matmul %77, %66, %cst_46 {dimension_numbers = #tpu.dot_dimension_numbers<[1], [0], [0], [1], [0, 0, 1, 1], [], []>} : vector<4x128xbf16>, vector<128x384xbf16>, vector<4x384xf32> -> vector<4x384xf32>
    %79 = vector.broadcast %72 : vector<1x384xf32> to vector<4x384xf32>
    %80 = arith.addf %78, %79 : vector<4x384xf32>
    %81 = vector.extract_strided_slice %80 {offsets = [0, 0], sizes = [4, 128], strides = [1, 1]} : vector<4x384xf32> to vector<4x128xf32>
    %82 = vector.extract_strided_slice %80 {offsets = [0, 128], sizes = [4, 128], strides = [1, 1]} : vector<4x384xf32> to vector<4x128xf32>
    %83 = vector.extract_strided_slice %80 {offsets = [0, 256], sizes = [4, 128], strides = [1, 1]} : vector<4x384xf32> to vector<4x128xf32>
    %84 = vector.extract_strided_slice %80 {offsets = [0, 128], sizes = [4, 256], strides = [1, 1]} : vector<4x384xf32> to vector<4x256xf32>
    %cst_47 = arith.constant dense<0.000000e+00> : vector<4x256xf32>
    %85 = tpu.matmul %64, %84, %cst_47 {dimension_numbers = #tpu.dot_dimension_numbers<[1], [0], [0], [1], [0, 0, 1, 1], [], []>} : vector<4x4xf32>, vector<4x256xf32>, vector<4x256xf32> -> vector<4x256xf32>
    %86 = vector.extract_strided_slice %85 {offsets = [0, 0], sizes = [4, 128], strides = [1, 1]} : vector<4x256xf32> to vector<4x128xf32>
    %87 = vector.extract_strided_slice %85 {offsets = [0, 128], sizes = [4, 128], strides = [1, 1]} : vector<4x256xf32> to vector<4x128xf32>
    %88 = arith.mulf %81, %82 : vector<4x128xf32>
    %cst_48 = arith.constant dense<0.000000e+00> : vector<4x8xf32>
    %89 = tpu.matmul %88, %62, %cst_48 {dimension_numbers = #tpu.dot_dimension_numbers<[1], [0], [0], [1], [0, 0, 1, 1], [], []>} : vector<4x128xf32>, vector<128x8xf32>, vector<4x8xf32> -> vector<4x8xf32>
    %90 = arith.mulf %81, %86 : vector<4x128xf32>
    %cst_49 = arith.constant dense<0.000000e+00> : vector<4x8xf32>
    %91 = tpu.matmul %90, %62, %cst_49 {dimension_numbers = #tpu.dot_dimension_numbers<[1], [0], [0], [1], [0, 0, 1, 1], [], []>} : vector<4x128xf32>, vector<128x8xf32>, vector<4x8xf32> -> vector<4x8xf32>
    %92 = arith.subf %91, %89 : vector<4x8xf32>
    %93 = math.exp %92 : vector<4x8xf32>
    %cst_50 = arith.constant 1.000000e+00 : f32
    %94 = vector.broadcast %cst_50 : f32 to vector<4x8xf32>
    %95 = arith.addf %94, %93 : vector<4x8xf32>
    %96 = tpu.reciprocal %95 {approx = true} : vector<4x8xf32> -> vector<4x8xf32>
    %cst_51 = arith.constant dense<0.000000e+00> : vector<4x128xf32>
    %97 = tpu.matmul %96, %63, %cst_51 {dimension_numbers = #tpu.dot_dimension_numbers<[1], [0], [0], [1], [0, 0, 1, 1], [], []>} : vector<4x8xf32>, vector<8x128xf32>, vector<4x128xf32> -> vector<4x128xf32>
    %98 = arith.subf %83, %87 : vector<4x128xf32>
    %99 = arith.mulf %97, %98 : vector<4x128xf32>
    %100 = arith.addf %87, %99 : vector<4x128xf32>
    %101 = arith.addf %61, %100 : vector<4x128xf32>
    %102 = vector.shape_cast %101 : vector<4x128xf32> to vector<1x4x128xf32>
    %cst_52 = arith.constant dense<0.000000e+00> : vector<1xf32>
    %103 = vector.multi_reduction <add>, %102, %cst_52 [1, 2] : vector<1x4x128xf32> to vector<1xf32>
    %104 = vector.shape_cast %103 : vector<1xf32> to vector<1x1x1xf32>
    %105 = vector.extract %104[0, 0, 0] : f32 from vector<1x1x1xf32>
    %106 = arith.mulf %101, %101 : vector<4x128xf32>
    %107 = vector.shape_cast %106 : vector<4x128xf32> to vector<1x4x128xf32>
    %cst_53 = arith.constant dense<0.000000e+00> : vector<1xf32>
    %108 = vector.multi_reduction <add>, %107, %cst_53 [1, 2] : vector<1x4x128xf32> to vector<1xf32>
    %109 = vector.shape_cast %108 : vector<1xf32> to vector<1x1x1xf32>
    %110 = vector.extract %109[0, 0, 0] : f32 from vector<1x1x1xf32>
    %cst_54 = arith.constant 0.001953125 : f32
    %111 = arith.mulf %105, %cst_54 : f32
    %cst_55 = arith.constant 0.001953125 : f32
    %112 = arith.mulf %110, %cst_55 : f32
    %113 = arith.mulf %111, %111 : f32
    %114 = arith.subf %112, %113 : f32
    %115 = vector.broadcast %111 : f32 to vector<4x128xf32>
    %116 = arith.subf %101, %115 : vector<4x128xf32>
    %cst_56 = arith.constant 9.99999974E-6 : f32
    %117 = arith.addf %114, %cst_56 : f32
    %118 = math.rsqrt %117 : f32
    %119 = vector.broadcast %118 : f32 to vector<4x128xf32>
    %120 = arith.mulf %116, %119 : vector<4x128xf32>
    %121 = arith.truncf %120 : vector<4x128xf32> to vector<4x128xbf16>
    %cst_57 = arith.constant dense<0.000000e+00> : vector<4x128xf32>
    %122 = tpu.matmul %121, %68, %cst_57 {dimension_numbers = #tpu.dot_dimension_numbers<[1], [0], [0], [1], [0, 0, 1, 1], [], []>} : vector<4x128xbf16>, vector<128x128xbf16>, vector<4x128xf32> -> vector<4x128xf32>
    %123 = vector.broadcast %74 : vector<1x128xf32> to vector<4x128xf32>
    %124 = arith.addf %122, %123 : vector<4x128xf32>
    %cst_58 = arith.constant 0.000000e+00 : f32
    %125 = vector.broadcast %cst_58 : f32 to vector<4x128xf32>
    %126 = arith.cmpf oge, %124, %125 : vector<4x128xf32>
    %cst_59 = arith.constant 0.00999999977 : f32
    %127 = vector.broadcast %cst_59 : f32 to vector<4x128xf32>
    %128 = arith.mulf %127, %124 : vector<4x128xf32>
    %129 = arith.select %126, %124, %128 : vector<4x128xi1>, vector<4x128xf32>
    %130 = arith.truncf %129 : vector<4x128xf32> to vector<4x128xbf16>
    %cst_60 = arith.constant dense<0.000000e+00> : vector<4x128xf32>
    %131 = tpu.matmul %130, %70, %cst_60 {dimension_numbers = #tpu.dot_dimension_numbers<[1], [0], [0], [1], [0, 0, 1, 1], [], []>} : vector<4x128xbf16>, vector<128x128xbf16>, vector<4x128xf32> -> vector<4x128xf32>
    %132 = arith.addf %120, %131 : vector<4x128xf32>
    %133 = vector.broadcast %76 : vector<1x128xf32> to vector<4x128xf32>
    %134 = arith.addf %132, %133 : vector<4x128xf32>
    %135 = vector.shape_cast %134 : vector<4x128xf32> to vector<1x4x128xf32>
    %cst_61 = arith.constant dense<0.000000e+00> : vector<1xf32>
    %136 = vector.multi_reduction <add>, %135, %cst_61 [1, 2] : vector<1x4x128xf32> to vector<1xf32>
    %137 = vector.shape_cast %136 : vector<1xf32> to vector<1x1x1xf32>
    %138 = vector.extract %137[0, 0, 0] : f32 from vector<1x1x1xf32>
    %139 = arith.mulf %134, %134 : vector<4x128xf32>
    %140 = vector.shape_cast %139 : vector<4x128xf32> to vector<1x4x128xf32>
    %cst_62 = arith.constant dense<0.000000e+00> : vector<1xf32>
    %141 = vector.multi_reduction <add>, %140, %cst_62 [1, 2] : vector<1x4x128xf32> to vector<1xf32>
    %142 = vector.shape_cast %141 : vector<1xf32> to vector<1x1x1xf32>
    %143 = vector.extract %142[0, 0, 0] : f32 from vector<1x1x1xf32>
    %cst_63 = arith.constant 0.001953125 : f32
    %144 = arith.mulf %138, %cst_63 : f32
    %cst_64 = arith.constant 0.001953125 : f32
    %145 = arith.mulf %143, %cst_64 : f32
    %146 = arith.mulf %144, %144 : f32
    %147 = arith.subf %145, %146 : f32
    %148 = vector.broadcast %144 : f32 to vector<4x128xf32>
    %149 = arith.subf %134, %148 : vector<4x128xf32>
    %cst_65 = arith.constant 9.99999974E-6 : f32
    %150 = arith.addf %147, %cst_65 : f32
    %151 = math.rsqrt %150 : f32
    %152 = vector.broadcast %151 : f32 to vector<4x128xf32>
    %153 = arith.mulf %149, %152 : vector<4x128xf32>
    %c1 = arith.constant 1 : index
    %c0_66 = arith.constant 0 : index
    %c0_67 = arith.constant 0 : index
    %154 = vector.load %arg3[%c1, %c0_66, %c0_67] : memref<3x128x640xbf16, #tpu.memory_space<vmem>>, vector<1x128x384xbf16>
    %155 = vector.shape_cast %154 : vector<1x128x384xbf16> to vector<128x384xbf16>
    %c1_68 = arith.constant 1 : index
    %c0_69 = arith.constant 0 : index
    %c384_70 = arith.constant 384 : index
    %156 = vector.load %arg3[%c1_68, %c0_69, %c384_70] : memref<3x128x640xbf16, #tpu.memory_space<vmem>>, vector<1x128x128xbf16>
    %157 = vector.shape_cast %156 : vector<1x128x128xbf16> to vector<128x128xbf16>
    %c1_71 = arith.constant 1 : index
    %c0_72 = arith.constant 0 : index
    %c512_73 = arith.constant 512 : index
    %158 = vector.load %arg3[%c1_71, %c0_72, %c512_73] : memref<3x128x640xbf16, #tpu.memory_space<vmem>>, vector<1x128x128xbf16>
    %159 = vector.shape_cast %158 : vector<1x128x128xbf16> to vector<128x128xbf16>
    %c1_74 = arith.constant 1 : index
    %c0_75 = arith.constant 0 : index
    %c0_76 = arith.constant 0 : index
    %160 = vector.load %arg4[%c1_74, %c0_75, %c0_76] : memref<3x1x640xf32, #tpu.memory_space<vmem>>, vector<1x1x384xf32>
    %161 = vector.shape_cast %160 : vector<1x1x384xf32> to vector<1x384xf32>
    %c1_77 = arith.constant 1 : index
    %c0_78 = arith.constant 0 : index
    %c384_79 = arith.constant 384 : index
    %162 = vector.load %arg4[%c1_77, %c0_78, %c384_79] : memref<3x1x640xf32, #tpu.memory_space<vmem>>, vector<1x1x128xf32>
    %163 = vector.shape_cast %162 : vector<1x1x128xf32> to vector<1x128xf32>
    %c1_80 = arith.constant 1 : index
    %c0_81 = arith.constant 0 : index
    %c512_82 = arith.constant 512 : index
    %164 = vector.load %arg4[%c1_80, %c0_81, %c512_82] : memref<3x1x640xf32, #tpu.memory_space<vmem>>, vector<1x1x128xf32>
    %165 = vector.shape_cast %164 : vector<1x1x128xf32> to vector<1x128xf32>
    %166 = arith.truncf %153 : vector<4x128xf32> to vector<4x128xbf16>
    %cst_83 = arith.constant dense<0.000000e+00> : vector<4x384xf32>
    %167 = tpu.matmul %166, %155, %cst_83 {dimension_numbers = #tpu.dot_dimension_numbers<[1], [0], [0], [1], [0, 0, 1, 1], [], []>} : vector<4x128xbf16>, vector<128x384xbf16>, vector<4x384xf32> -> vector<4x384xf32>
    %168 = vector.broadcast %161 : vector<1x384xf32> to vector<4x384xf32>
    %169 = arith.addf %167, %168 : vector<4x384xf32>
    %170 = vector.extract_strided_slice %169 {offsets = [0, 0], sizes = [4, 128], strides = [1, 1]} : vector<4x384xf32> to vector<4x128xf32>
    %171 = vector.extract_strided_slice %169 {offsets = [0, 128], sizes = [4, 128], strides = [1, 1]} : vector<4x384xf32> to vector<4x128xf32>
    %172 = vector.extract_strided_slice %169 {offsets = [0, 256], sizes = [4, 128], strides = [1, 1]} : vector<4x384xf32> to vector<4x128xf32>
    %173 = vector.extract_strided_slice %169 {offsets = [0, 128], sizes = [4, 256], strides = [1, 1]} : vector<4x384xf32> to vector<4x256xf32>
    %cst_84 = arith.constant dense<0.000000e+00> : vector<4x256xf32>
    %174 = tpu.matmul %64, %173, %cst_84 {dimension_numbers = #tpu.dot_dimension_numbers<[1], [0], [0], [1], [0, 0, 1, 1], [], []>} : vector<4x4xf32>, vector<4x256xf32>, vector<4x256xf32> -> vector<4x256xf32>
    %175 = vector.extract_strided_slice %174 {offsets = [0, 0], sizes = [4, 128], strides = [1, 1]} : vector<4x256xf32> to vector<4x128xf32>
    %176 = vector.extract_strided_slice %174 {offsets = [0, 128], sizes = [4, 128], strides = [1, 1]} : vector<4x256xf32> to vector<4x128xf32>
    %177 = arith.mulf %170, %171 : vector<4x128xf32>
    %cst_85 = arith.constant dense<0.000000e+00> : vector<4x8xf32>
    %178 = tpu.matmul %177, %62, %cst_85 {dimension_numbers = #tpu.dot_dimension_numbers<[1], [0], [0], [1], [0, 0, 1, 1], [], []>} : vector<4x128xf32>, vector<128x8xf32>, vector<4x8xf32> -> vector<4x8xf32>
    %179 = arith.mulf %170, %175 : vector<4x128xf32>
    %cst_86 = arith.constant dense<0.000000e+00> : vector<4x8xf32>
    %180 = tpu.matmul %179, %62, %cst_86 {dimension_numbers = #tpu.dot_dimension_numbers<[1], [0], [0], [1], [0, 0, 1, 1], [], []>} : vector<4x128xf32>, vector<128x8xf32>, vector<4x8xf32> -> vector<4x8xf32>
    %181 = arith.subf %180, %178 : vector<4x8xf32>
    %182 = math.exp %181 : vector<4x8xf32>
    %cst_87 = arith.constant 1.000000e+00 : f32
    %183 = vector.broadcast %cst_87 : f32 to vector<4x8xf32>
    %184 = arith.addf %183, %182 : vector<4x8xf32>
    %185 = tpu.reciprocal %184 {approx = true} : vector<4x8xf32> -> vector<4x8xf32>
    %cst_88 = arith.constant dense<0.000000e+00> : vector<4x128xf32>
    %186 = tpu.matmul %185, %63, %cst_88 {dimension_numbers = #tpu.dot_dimension_numbers<[1], [0], [0], [1], [0, 0, 1, 1], [], []>} : vector<4x8xf32>, vector<8x128xf32>, vector<4x128xf32> -> vector<4x128xf32>
    %187 = arith.subf %172, %176 : vector<4x128xf32>
    %188 = arith.mulf %186, %187 : vector<4x128xf32>
    %189 = arith.addf %176, %188 : vector<4x128xf32>
    %190 = arith.addf %153, %189 : vector<4x128xf32>
    %191 = vector.shape_cast %190 : vector<4x128xf32> to vector<1x4x128xf32>
    %cst_89 = arith.constant dense<0.000000e+00> : vector<1xf32>
    %192 = vector.multi_reduction <add>, %191, %cst_89 [1, 2] : vector<1x4x128xf32> to vector<1xf32>
    %193 = vector.shape_cast %192 : vector<1xf32> to vector<1x1x1xf32>
    %194 = vector.extract %193[0, 0, 0] : f32 from vector<1x1x1xf32>
    %195 = arith.mulf %190, %190 : vector<4x128xf32>
    %196 = vector.shape_cast %195 : vector<4x128xf32> to vector<1x4x128xf32>
    %cst_90 = arith.constant dense<0.000000e+00> : vector<1xf32>
    %197 = vector.multi_reduction <add>, %196, %cst_90 [1, 2] : vector<1x4x128xf32> to vector<1xf32>
    %198 = vector.shape_cast %197 : vector<1xf32> to vector<1x1x1xf32>
    %199 = vector.extract %198[0, 0, 0] : f32 from vector<1x1x1xf32>
    %cst_91 = arith.constant 0.001953125 : f32
    %200 = arith.mulf %194, %cst_91 : f32
    %cst_92 = arith.constant 0.001953125 : f32
    %201 = arith.mulf %199, %cst_92 : f32
    %202 = arith.mulf %200, %200 : f32
    %203 = arith.subf %201, %202 : f32
    %204 = vector.broadcast %200 : f32 to vector<4x128xf32>
    %205 = arith.subf %190, %204 : vector<4x128xf32>
    %cst_93 = arith.constant 9.99999974E-6 : f32
    %206 = arith.addf %203, %cst_93 : f32
    %207 = math.rsqrt %206 : f32
    %208 = vector.broadcast %207 : f32 to vector<4x128xf32>
    %209 = arith.mulf %205, %208 : vector<4x128xf32>
    %210 = arith.truncf %209 : vector<4x128xf32> to vector<4x128xbf16>
    %cst_94 = arith.constant dense<0.000000e+00> : vector<4x128xf32>
    %211 = tpu.matmul %210, %157, %cst_94 {dimension_numbers = #tpu.dot_dimension_numbers<[1], [0], [0], [1], [0, 0, 1, 1], [], []>} : vector<4x128xbf16>, vector<128x128xbf16>, vector<4x128xf32> -> vector<4x128xf32>
    %212 = vector.broadcast %163 : vector<1x128xf32> to vector<4x128xf32>
    %213 = arith.addf %211, %212 : vector<4x128xf32>
    %cst_95 = arith.constant 0.000000e+00 : f32
    %214 = vector.broadcast %cst_95 : f32 to vector<4x128xf32>
    %215 = arith.cmpf oge, %213, %214 : vector<4x128xf32>
    %cst_96 = arith.constant 0.00999999977 : f32
    %216 = vector.broadcast %cst_96 : f32 to vector<4x128xf32>
    %217 = arith.mulf %216, %213 : vector<4x128xf32>
    %218 = arith.select %215, %213, %217 : vector<4x128xi1>, vector<4x128xf32>
    %219 = arith.truncf %218 : vector<4x128xf32> to vector<4x128xbf16>
    %cst_97 = arith.constant dense<0.000000e+00> : vector<4x128xf32>
    %220 = tpu.matmul %219, %159, %cst_97 {dimension_numbers = #tpu.dot_dimension_numbers<[1], [0], [0], [1], [0, 0, 1, 1], [], []>} : vector<4x128xbf16>, vector<128x128xbf16>, vector<4x128xf32> -> vector<4x128xf32>
    %221 = arith.addf %209, %220 : vector<4x128xf32>
    %222 = vector.broadcast %165 : vector<1x128xf32> to vector<4x128xf32>
    %223 = arith.addf %221, %222 : vector<4x128xf32>
    %224 = vector.shape_cast %223 : vector<4x128xf32> to vector<1x4x128xf32>
    %cst_98 = arith.constant dense<0.000000e+00> : vector<1xf32>
    %225 = vector.multi_reduction <add>, %224, %cst_98 [1, 2] : vector<1x4x128xf32> to vector<1xf32>
    %226 = vector.shape_cast %225 : vector<1xf32> to vector<1x1x1xf32>
    %227 = vector.extract %226[0, 0, 0] : f32 from vector<1x1x1xf32>
    %228 = arith.mulf %223, %223 : vector<4x128xf32>
    %229 = vector.shape_cast %228 : vector<4x128xf32> to vector<1x4x128xf32>
    %cst_99 = arith.constant dense<0.000000e+00> : vector<1xf32>
    %230 = vector.multi_reduction <add>, %229, %cst_99 [1, 2] : vector<1x4x128xf32> to vector<1xf32>
    %231 = vector.shape_cast %230 : vector<1xf32> to vector<1x1x1xf32>
    %232 = vector.extract %231[0, 0, 0] : f32 from vector<1x1x1xf32>
    %cst_100 = arith.constant 0.001953125 : f32
    %233 = arith.mulf %227, %cst_100 : f32
    %cst_101 = arith.constant 0.001953125 : f32
    %234 = arith.mulf %232, %cst_101 : f32
    %235 = arith.mulf %233, %233 : f32
    %236 = arith.subf %234, %235 : f32
    %237 = vector.broadcast %233 : f32 to vector<4x128xf32>
    %238 = arith.subf %223, %237 : vector<4x128xf32>
    %cst_102 = arith.constant 9.99999974E-6 : f32
    %239 = arith.addf %236, %cst_102 : f32
    %240 = math.rsqrt %239 : f32
    %241 = vector.broadcast %240 : f32 to vector<4x128xf32>
    %242 = arith.mulf %238, %241 : vector<4x128xf32>
    %c2 = arith.constant 2 : index
    %c0_103 = arith.constant 0 : index
    %c0_104 = arith.constant 0 : index
    %243 = vector.load %arg3[%c2, %c0_103, %c0_104] : memref<3x128x640xbf16, #tpu.memory_space<vmem>>, vector<1x128x384xbf16>
    %244 = vector.shape_cast %243 : vector<1x128x384xbf16> to vector<128x384xbf16>
    %c2_105 = arith.constant 2 : index
    %c0_106 = arith.constant 0 : index
    %c384_107 = arith.constant 384 : index
    %245 = vector.load %arg3[%c2_105, %c0_106, %c384_107] : memref<3x128x640xbf16, #tpu.memory_space<vmem>>, vector<1x128x128xbf16>
    %246 = vector.shape_cast %245 : vector<1x128x128xbf16> to vector<128x128xbf16>
    %c2_108 = arith.constant 2 : index
    %c0_109 = arith.constant 0 : index
    %c512_110 = arith.constant 512 : index
    %247 = vector.load %arg3[%c2_108, %c0_109, %c512_110] : memref<3x128x640xbf16, #tpu.memory_space<vmem>>, vector<1x128x128xbf16>
    %248 = vector.shape_cast %247 : vector<1x128x128xbf16> to vector<128x128xbf16>
    %c2_111 = arith.constant 2 : index
    %c0_112 = arith.constant 0 : index
    %c0_113 = arith.constant 0 : index
    %249 = vector.load %arg4[%c2_111, %c0_112, %c0_113] : memref<3x1x640xf32, #tpu.memory_space<vmem>>, vector<1x1x384xf32>
    %250 = vector.shape_cast %249 : vector<1x1x384xf32> to vector<1x384xf32>
    %c2_114 = arith.constant 2 : index
    %c0_115 = arith.constant 0 : index
    %c384_116 = arith.constant 384 : index
    %251 = vector.load %arg4[%c2_114, %c0_115, %c384_116] : memref<3x1x640xf32, #tpu.memory_space<vmem>>, vector<1x1x128xf32>
    %252 = vector.shape_cast %251 : vector<1x1x128xf32> to vector<1x128xf32>
    %c2_117 = arith.constant 2 : index
    %c0_118 = arith.constant 0 : index
    %c512_119 = arith.constant 512 : index
    %253 = vector.load %arg4[%c2_117, %c0_118, %c512_119] : memref<3x1x640xf32, #tpu.memory_space<vmem>>, vector<1x1x128xf32>
    %254 = vector.shape_cast %253 : vector<1x1x128xf32> to vector<1x128xf32>
    %255 = arith.truncf %242 : vector<4x128xf32> to vector<4x128xbf16>
    %cst_120 = arith.constant dense<0.000000e+00> : vector<4x384xf32>
    %256 = tpu.matmul %255, %244, %cst_120 {dimension_numbers = #tpu.dot_dimension_numbers<[1], [0], [0], [1], [0, 0, 1, 1], [], []>} : vector<4x128xbf16>, vector<128x384xbf16>, vector<4x384xf32> -> vector<4x384xf32>
    %257 = vector.broadcast %250 : vector<1x384xf32> to vector<4x384xf32>
    %258 = arith.addf %256, %257 : vector<4x384xf32>
    %259 = vector.extract_strided_slice %258 {offsets = [0, 0], sizes = [4, 128], strides = [1, 1]} : vector<4x384xf32> to vector<4x128xf32>
    %260 = vector.extract_strided_slice %258 {offsets = [0, 128], sizes = [4, 128], strides = [1, 1]} : vector<4x384xf32> to vector<4x128xf32>
    %261 = vector.extract_strided_slice %258 {offsets = [0, 256], sizes = [4, 128], strides = [1, 1]} : vector<4x384xf32> to vector<4x128xf32>
    %262 = vector.extract_strided_slice %258 {offsets = [0, 128], sizes = [4, 256], strides = [1, 1]} : vector<4x384xf32> to vector<4x256xf32>
    %cst_121 = arith.constant dense<0.000000e+00> : vector<4x256xf32>
    %263 = tpu.matmul %64, %262, %cst_121 {dimension_numbers = #tpu.dot_dimension_numbers<[1], [0], [0], [1], [0, 0, 1, 1], [], []>} : vector<4x4xf32>, vector<4x256xf32>, vector<4x256xf32> -> vector<4x256xf32>
    %264 = vector.extract_strided_slice %263 {offsets = [0, 0], sizes = [4, 128], strides = [1, 1]} : vector<4x256xf32> to vector<4x128xf32>
    %265 = vector.extract_strided_slice %263 {offsets = [0, 128], sizes = [4, 128], strides = [1, 1]} : vector<4x256xf32> to vector<4x128xf32>
    %266 = arith.mulf %259, %260 : vector<4x128xf32>
    %cst_122 = arith.constant dense<0.000000e+00> : vector<4x8xf32>
    %267 = tpu.matmul %266, %62, %cst_122 {dimension_numbers = #tpu.dot_dimension_numbers<[1], [0], [0], [1], [0, 0, 1, 1], [], []>} : vector<4x128xf32>, vector<128x8xf32>, vector<4x8xf32> -> vector<4x8xf32>
    %268 = arith.mulf %259, %264 : vector<4x128xf32>
    %cst_123 = arith.constant dense<0.000000e+00> : vector<4x8xf32>
    %269 = tpu.matmul %268, %62, %cst_123 {dimension_numbers = #tpu.dot_dimension_numbers<[1], [0], [0], [1], [0, 0, 1, 1], [], []>} : vector<4x128xf32>, vector<128x8xf32>, vector<4x8xf32> -> vector<4x8xf32>
    %270 = arith.subf %269, %267 : vector<4x8xf32>
    %271 = math.exp %270 : vector<4x8xf32>
    %cst_124 = arith.constant 1.000000e+00 : f32
    %272 = vector.broadcast %cst_124 : f32 to vector<4x8xf32>
    %273 = arith.addf %272, %271 : vector<4x8xf32>
    %274 = tpu.reciprocal %273 {approx = true} : vector<4x8xf32> -> vector<4x8xf32>
    %cst_125 = arith.constant dense<0.000000e+00> : vector<4x128xf32>
    %275 = tpu.matmul %274, %63, %cst_125 {dimension_numbers = #tpu.dot_dimension_numbers<[1], [0], [0], [1], [0, 0, 1, 1], [], []>} : vector<4x8xf32>, vector<8x128xf32>, vector<4x128xf32> -> vector<4x128xf32>
    %276 = arith.subf %261, %265 : vector<4x128xf32>
    %277 = arith.mulf %275, %276 : vector<4x128xf32>
    %278 = arith.addf %265, %277 : vector<4x128xf32>
    %279 = arith.addf %242, %278 : vector<4x128xf32>
    %280 = vector.shape_cast %279 : vector<4x128xf32> to vector<1x4x128xf32>
    %cst_126 = arith.constant dense<0.000000e+00> : vector<1xf32>
    %281 = vector.multi_reduction <add>, %280, %cst_126 [1, 2] : vector<1x4x128xf32> to vector<1xf32>
    %282 = vector.shape_cast %281 : vector<1xf32> to vector<1x1x1xf32>
    %283 = vector.extract %282[0, 0, 0] : f32 from vector<1x1x1xf32>
    %284 = arith.mulf %279, %279 : vector<4x128xf32>
    %285 = vector.shape_cast %284 : vector<4x128xf32> to vector<1x4x128xf32>
    %cst_127 = arith.constant dense<0.000000e+00> : vector<1xf32>
    %286 = vector.multi_reduction <add>, %285, %cst_127 [1, 2] : vector<1x4x128xf32> to vector<1xf32>
    %287 = vector.shape_cast %286 : vector<1xf32> to vector<1x1x1xf32>
    %288 = vector.extract %287[0, 0, 0] : f32 from vector<1x1x1xf32>
    %cst_128 = arith.constant 0.001953125 : f32
    %289 = arith.mulf %283, %cst_128 : f32
    %cst_129 = arith.constant 0.001953125 : f32
    %290 = arith.mulf %288, %cst_129 : f32
    %291 = arith.mulf %289, %289 : f32
    %292 = arith.subf %290, %291 : f32
    %293 = vector.broadcast %289 : f32 to vector<4x128xf32>
    %294 = arith.subf %279, %293 : vector<4x128xf32>
    %cst_130 = arith.constant 9.99999974E-6 : f32
    %295 = arith.addf %292, %cst_130 : f32
    %296 = math.rsqrt %295 : f32
    %297 = vector.broadcast %296 : f32 to vector<4x128xf32>
    %298 = arith.mulf %294, %297 : vector<4x128xf32>
    %299 = arith.truncf %298 : vector<4x128xf32> to vector<4x128xbf16>
    %cst_131 = arith.constant dense<0.000000e+00> : vector<4x128xf32>
    %300 = tpu.matmul %299, %246, %cst_131 {dimension_numbers = #tpu.dot_dimension_numbers<[1], [0], [0], [1], [0, 0, 1, 1], [], []>} : vector<4x128xbf16>, vector<128x128xbf16>, vector<4x128xf32> -> vector<4x128xf32>
    %301 = vector.broadcast %252 : vector<1x128xf32> to vector<4x128xf32>
    %302 = arith.addf %300, %301 : vector<4x128xf32>
    %cst_132 = arith.constant 0.000000e+00 : f32
    %303 = vector.broadcast %cst_132 : f32 to vector<4x128xf32>
    %304 = arith.cmpf oge, %302, %303 : vector<4x128xf32>
    %cst_133 = arith.constant 0.00999999977 : f32
    %305 = vector.broadcast %cst_133 : f32 to vector<4x128xf32>
    %306 = arith.mulf %305, %302 : vector<4x128xf32>
    %307 = arith.select %304, %302, %306 : vector<4x128xi1>, vector<4x128xf32>
    %308 = arith.truncf %307 : vector<4x128xf32> to vector<4x128xbf16>
    %cst_134 = arith.constant dense<0.000000e+00> : vector<4x128xf32>
    %309 = tpu.matmul %308, %248, %cst_134 {dimension_numbers = #tpu.dot_dimension_numbers<[1], [0], [0], [1], [0, 0, 1, 1], [], []>} : vector<4x128xbf16>, vector<128x128xbf16>, vector<4x128xf32> -> vector<4x128xf32>
    %310 = arith.addf %298, %309 : vector<4x128xf32>
    %311 = vector.broadcast %254 : vector<1x128xf32> to vector<4x128xf32>
    %312 = arith.addf %310, %311 : vector<4x128xf32>
    %313 = vector.shape_cast %312 : vector<4x128xf32> to vector<1x4x128xf32>
    %cst_135 = arith.constant dense<0.000000e+00> : vector<1xf32>
    %314 = vector.multi_reduction <add>, %313, %cst_135 [1, 2] : vector<1x4x128xf32> to vector<1xf32>
    %315 = vector.shape_cast %314 : vector<1xf32> to vector<1x1x1xf32>
    %316 = vector.extract %315[0, 0, 0] : f32 from vector<1x1x1xf32>
    %317 = arith.mulf %312, %312 : vector<4x128xf32>
    %318 = vector.shape_cast %317 : vector<4x128xf32> to vector<1x4x128xf32>
    %cst_136 = arith.constant dense<0.000000e+00> : vector<1xf32>
    %319 = vector.multi_reduction <add>, %318, %cst_136 [1, 2] : vector<1x4x128xf32> to vector<1xf32>
    %320 = vector.shape_cast %319 : vector<1xf32> to vector<1x1x1xf32>
    %321 = vector.extract %320[0, 0, 0] : f32 from vector<1x1x1xf32>
    %cst_137 = arith.constant 0.001953125 : f32
    %322 = arith.mulf %316, %cst_137 : f32
    %cst_138 = arith.constant 0.001953125 : f32
    %323 = arith.mulf %321, %cst_138 : f32
    %324 = arith.mulf %322, %322 : f32
    %325 = arith.subf %323, %324 : f32
    %326 = vector.broadcast %322 : f32 to vector<4x128xf32>
    %327 = arith.subf %312, %326 : vector<4x128xf32>
    %cst_139 = arith.constant 9.99999974E-6 : f32
    %328 = arith.addf %325, %cst_139 : f32
    %329 = math.rsqrt %328 : f32
    %330 = vector.broadcast %329 : f32 to vector<4x128xf32>
    %331 = arith.mulf %327, %330 : vector<4x128xf32>
    %c0_140 = arith.constant 0 : index
    %c0_141 = arith.constant 0 : index
    %332 = vector.load %arg8[%c0_140, %c0_141] : memref<128x128xbf16, #tpu.memory_space<vmem>>, vector<128x128xbf16>
    %333 = arith.truncf %331 : vector<4x128xf32> to vector<4x128xbf16>
    %cst_142 = arith.constant dense<0.000000e+00> : vector<4x128xf32>
    %334 = tpu.matmul %333, %332, %cst_142 {dimension_numbers = #tpu.dot_dimension_numbers<[1], [0], [0], [1], [0, 0, 1, 1], [], []>} : vector<4x128xbf16>, vector<128x128xbf16>, vector<4x128xf32> -> vector<4x128xf32>
    %c0_143 = arith.constant 0 : index
    %c0_144 = arith.constant 0 : index
    %335 = vector.load %arg9[%c0_143, %c0_144] : memref<1x128xf32, #tpu.memory_space<vmem>>, vector<1x128xf32>
    %336 = vector.broadcast %335 : vector<1x128xf32> to vector<4x128xf32>
    %337 = arith.addf %334, %336 : vector<4x128xf32>
    %c0_145 = arith.constant 0 : index
    %c0_146 = arith.constant 0 : index
    %338 = vector.load %arg10[%c0_145, %c0_146] : memref<4x128xf32, #tpu.memory_space<vmem>>, vector<4x128xf32>
    tpu.vector_store %arg10[%c0_145, %c0_146], %337 {strides = array<i32>} : memref<4x128xf32, #tpu.memory_space<vmem>>, vector<4x128xf32>,
    return
  }
}

</mosaic_0001>

<bundles_post_ra>
// kernel: tpu_custom_call.1
= control target key start
LH: loop header
LB: loop body
LE: loop exit
PB: predicated region body
PF: predicated region fallthrough
CT: control target
= control target key end

     0   :  { %15 = vsyncpa [#allocation3], 0  ;;  %s5563_s0 = inlined_call_operand.vmem [shape: f32[4,784], index: 0, kind: input, shape index: {}]   ;;  %s5564_s1 = inlined_call_operand.hbm [shape: bf16[912,128], index: 1, kind: input, shape index: {}]   ;;  %s5565_s2 = inlined_call_operand.vmem [shape: f32[1,384], index: 2, kind: input, shape index: {}]   ;;  %s5566_s3 = inlined_call_operand.hbm [shape: bf16[3,128,640], index: 3, kind: input, shape index: {}]   ;;  %s5567_s4 = inlined_call_operand.vmem [shape: f32[3,1,640], index: 4, kind: input, shape index: {}]   ;;  %s5568_s5 = inlined_call_operand.vmem [shape: f32[128,8], index: 5, kind: input, shape index: {}]   ;;  %s5569_s6 = inlined_call_operand.vmem [shape: f32[8,128], index: 6, kind: input, shape index: {}]   ;;  %s5570_s7 = inlined_call_operand.vmem [shape: f32[4,4], index: 7, kind: input, shape index: {}]   ;;  %s5571_s8 = inlined_call_operand.vmem [shape: bf16[128,128], index: 8, kind: input, shape index: {}]   ;;  %s5572_s9 = inlined_call_operand.vmem [shape: f32[1,128], index: 9, kind: input, shape index: {}]   ;;  %s5573_s10 = inlined_call_operand.hbm [shape: f32[4,128], index: 10, kind: output, shape index: {}]  }
   0x1   :  { %16 = vsyncpa [#allocation6], 0 }
   0x2   :  { %17 = vsyncpa [#allocation4], 0  ;;  %s4966_s13 = smov [#allocation2]   ;;  %s4894_s17 = scalar_lea.hbm %s5564_s1, 7296 }
   0x3   :  { %s25_s14 = sshll.u32 %s4966_s13, 4  ;;  %p4895_p0 = scmp.ne.s32.totalorder %s5564_s1, %s4894_s17  ;;  %s26_s14 = int_to_ptr.vmem [resolvable:$true] %s25_s14 }
   0x4   :  { %p4898_p1 = scmp.lt.u32.totalorder %s4894_s17, %s5564_s1 }
   0x6   :  { %p4900_p2 = pnand %p4898_p1, %p4895_p0 }
   0x8   :  { %4903 = shalt.err (!%p4900_p2)
}
   0x9   :  { %s4904_s22 = scalar_lea.vmem %s26_s14, 7296  ;;  %p4909_p4 = scmp.lt.s32.totalorder %s26_s14, %s26_s14 }
   0xa   :  { %p4905_p3 = scmp.ne.s32.totalorder %s26_s14, %s4904_s22  ;;  %p4910_p5 = scmp.lt.s32.totalorder %s4904_s22, %s4904_s22 }
   0xc   :  { %p4911_p6 = por %p4910_p5, %p4909_p4 }
   0xe   :  { %p4912_p7 = pnand %p4911_p6, %p4905_p3 }
  0x10   :  { %4915 = shalt.err (!%p4912_p7)
}
  0x11   :  { %s4967_s23 = smov 64   ;;  %s4968_s24 = smov 4  }
  0x12   :  { %31 = dma.hbm_to_vmem [thread:$0]  %s5564_s1, 7296, %s26_s14, [#allocation3], %s4967_s23, %s4967_s23, %s4968_s24  }
  0x13   :  { %s4969_s27 = smov [#allocation5]   ;;  %s4916_s11 = scalar_lea.hbm %s5566_s3, 15360 }
  0x14   :  { %s39_s28 = sshll.u32 %s4969_s27, 4  ;;  %p4917_p8 = scmp.ne.s32.totalorder %s5566_s3, %s4916_s11  ;;  %s40_s28 = int_to_ptr.vmem [resolvable:$true] %s39_s28 }
  0x15   :  { %p4920_p9 = scmp.lt.u32.totalorder %s4916_s11, %s5566_s3 }
  0x17   :  { %p4922_p10 = pnand %p4920_p9, %p4917_p8 }
  0x19   :  { %4925 = shalt.err (!%p4922_p10)
}
  0x1a   :  { %s4926_s17 = scalar_lea.vmem %s40_s28, 15360  ;;  %p4931_p12 = scmp.lt.s32.totalorder %s40_s28, %s40_s28 }
  0x1b   :  { %p4927_p11 = scmp.ne.s32.totalorder %s40_s28, %s4926_s17  ;;  %p4932_p13 = scmp.lt.s32.totalorder %s4926_s17, %s4926_s17 }
  0x1d   :  { %p4933_p0 = por %p4932_p13, %p4931_p12 }
  0x1f   :  { %p4934_p1 = pnand %p4933_p0, %p4927_p11 }
  0x21   :  { %4937 = shalt.err (!%p4934_p1)
}
  0x22   :  { %s4970_s1 = smov 320   ;;  %s4971_s14 = smov 20  }
  0x23   :  { %45 = dma.hbm_to_vmem [thread:$0]  %s5566_s3, 15360, %s40_s28, [#allocation6], %s4970_s1, %s4970_s1, %s4971_s14  }
  0x24   :  { %4960 = dma.done.wait [#allocation3], 7296  }
  0x25   :  { %4961 = vsyncadd [#allocation3], 4294960000 }
  0x26   :  { %4962 = dma.done.wait [#allocation6], 15360  }
  0x27   :  { %4963 = vsyncadd [#allocation6], 4294951936  ;;  %v4652_v0 = vld [vmem:[#allocation2 + $0x40] sm:$0xff]   ;;  %v4656_v4 = vld [vmem:[#allocation2 + $0x48] sm:$0xff]   ;;  %v4972_v42 = vmov 0.0   ;;  %vm4973_vm0 = vmmov 0  }
  0x28   :  { %v4653_v1 = vld [vmem:[#allocation2] sm:$0xff]   ;;  %3734 = vmatprep.subr.bf16.mxu0 %v4652_v0  ;;  %v4657_v5 = vld [vmem:[#allocation2 + $0x8] sm:$0xff]   ;;  %v4660_v8 = vld [vmem:[#allocation2 + $0x50] sm:$0xff]   ;;  %vm512_vm1 = vcmask 130048   ;;  %vm1113_vm4 = vcmask 1043456   ;;  %vm1109_vm5 = vcmask 31744  }
  0x29   :  { %v4654_v2 = vld [vmem:[#allocation2 + $0xc0] sm:$0xff]   ;;  %3735 = vmatpush3.bf16.msra.mxu0 %v4653_v1  ;;  %v4658_v6 = vld [vmem:[#allocation2 + $0xc8] sm:$0xff]   ;;  %v4661_v9 = vld [vmem:[#allocation2 + $0x10] sm:$0xff]   ;;  %vm1338_vm6 = vcmask 64512  }
  0x2a   :  { %v4655_v3 = vld [vmem:[#allocation2 + $0x80] sm:$0xff]   ;;  %3756 = vmatprep.subr.bf16.mxu1 %v4654_v2  ;;  %3736 = vmatprep.subr.bf16.mxu0 %v4656_v4  ;;  %v4659_v7 = vld [vmem:[#allocation2 + $0x88] sm:$0xff]   ;;  %v4662_v10 = vld [vmem:[#allocation2 + $0xd0] sm:$0xff]  }
  0x2b   :  { %3757 = vmatpush3.bf16.msra.mxu1 %v4655_v3  ;;  %v4663_v11 = vld [vmem:[#allocation2 + $0x90] sm:$0xff]   ;;  %v4664_v12 = vld [vmem:[#allocation2 + $0x58] sm:$0xff]   ;;  %v4668_v16 = vld [vmem:[#allocation2 + $0x60] sm:$0xff]  }
  0x2c   :  { %3758 = vmatprep.subr.bf16.mxu1 %v4658_v6  ;;  %v4665_v13 = vld [vmem:[#allocation2 + $0x18] sm:$0xff]   ;;  %v4669_v17 = vld [vmem:[#allocation2 + $0x20] sm:$0xff]   ;;  %v4672_v20 = vld [vmem:[#allocation2 + $0x68] sm:$0xff]  }
  0x2d   :  { %3737 = vmatpush3.bf16.msra.mxu0 %v4657_v5  ;;  %v4666_v14 = vld [vmem:[#allocation2 + $0xd8] sm:$0xff]   ;;  %v4670_v18 = vld [vmem:[#allocation2 + $0xe0] sm:$0xff]   ;;  %v4673_v21 = vld [vmem:[#allocation2 + $0x28] sm:$0xff]  }
  0x2e   :  { %3738 = vmatprep.subr.bf16.mxu0 %v4660_v8  ;;  %v4667_v15 = vld [vmem:[#allocation2 + $0x98] sm:$0xff]   ;;  %v4671_v19 = vld [vmem:[#allocation2 + $0xa0] sm:$0xff]   ;;  %v4674_v22 = vld [vmem:[#allocation2 + $0xe8] sm:$0xff]  }
  0x2f   :  { %3759 = vmatpush3.bf16.msra.mxu1 %v4659_v7  ;;  %v4675_v23 = vld [vmem:[#allocation2 + $0xa8] sm:$0xff]   ;;  %v4676_v24 = vld [vmem:[#allocation2 + $0x70] sm:$0xff]   ;;  %v4680_v28 = vld [vmem:[#allocation2 + $0x78] sm:$0xff]  }
  0x30   :  { %3760 = vmatprep.subr.bf16.mxu1 %v4662_v10  ;;  %v4677_v25 = vld [vmem:[#allocation2 + $0x30] sm:$0xff]   ;;  %v4681_v29 = vld [vmem:[#allocation2 + $0x38] sm:$0xff]   ;;  %v185_v31 = vld [vmem:[%s5563_s0] sm:$0xff] }
  0x31   :  { %3739 = vmatpush3.bf16.msra.mxu0 %v4661_v9  ;;  %v4678_v26 = vld [vmem:[#allocation2 + $0xf0] sm:$0xff]   ;;  %v4682_v30 = vld [vmem:[#allocation2 + $0xf8] sm:$0xff]   ;;  %v192_v32 = vcombine.high %v185_v31, %v185_v31  ;;  %v198_v34 = vpack.c.bf16 %v185_v31, %v185_v31  ;;  %v4685_v35 = vld [vmem:[#allocation2 + $0x140] sm:$0xff]  }
  0x32   :  { %3740 = vmatprep.subr.bf16.mxu0 %v4664_v12  ;;  %v4679_v27 = vld [vmem:[#allocation2 + $0xb0] sm:$0xff]   ;;  %v4684_v33 = vld [vmem:[#allocation2 + $0xb8] sm:$0xff]   ;;  %v186_v36 = vld [vmem:[%s5563_s0 + $0x8] sm:$0xff] }
  0x33   :  { %3761 = vmatpush3.bf16.msra.mxu1 %v4663_v11  ;;  %v199_v37 = vpack.c.bf16 %v192_v32, %v192_v32  ;;  %v193_v38 = vcombine.high %v186_v36, %v186_v36  ;;  %v4687_v39 = vld [vmem:[#allocation2 + $0x100] sm:$0xff]   ;;  %v200_v40 = vpack.c.bf16 %v186_v36, %v186_v36  ;;  %v4688_v41 = vld [vmem:[#allocation2 + $0x148] sm:$0xff]   ;;  %v4690_v45 = vld [vmem:[#allocation2 + $0x150] sm:$0xff]  }
  0x34   :  { %3762 = vmatprep.subr.bf16.mxu1 %v4666_v14  ;;  %v4689_v44 = vld [vmem:[#allocation2 + $0x108] sm:$0xff]   ;;  %v4691_v46 = vld [vmem:[#allocation2 + $0x110] sm:$0xff]   ;;  %v4692_v47 = vld [vmem:[#allocation2 + $0x158] sm:$0xff]  }
  0x35   :  { %3741 = vmatpush3.bf16.msra.mxu0 %v4665_v13  ;;  %548 = vmatprep.mubr.bf16.mxu0 %v199_v37  ;;  %v201_v43 = vpack.c.bf16 %v193_v38, %v193_v38  ;;  %v4693_v48 = vld [vmem:[#allocation2 + $0x118] sm:$0xff]   ;;  %v4694_v49 = vld [vmem:[#allocation2 + $0x160] sm:$0xff]   ;;  %v187_v50 = vld [vmem:[%s5563_s0 + $0x10] sm:$0xff] }
  0x36   :  { %3742 = vmatprep.subr.bf16.mxu0 %v4668_v16  ;;  %v4695_v51 = vld [vmem:[#allocation2 + $0x120] sm:$0xff]   ;;  %v194_v52 = vcombine.high %v187_v50, %v187_v50  ;;  %v4696_v53 = vld [vmem:[#allocation2 + $0x168] sm:$0xff]   ;;  %v4698_v56 = vld [vmem:[#allocation2 + $0x170] sm:$0xff]   ;;  %v202_v61 = vpack.c.bf16 %v187_v50, %v187_v50 }
  0x37   :  { %3763 = vmatpush3.bf16.msra.mxu1 %v4667_v15  ;;  %588 = vmatprep.mubr.bf16.mxu1 %v201_v43  ;;  %v4697_v55 = vld [vmem:[#allocation2 + $0x128] sm:$0xff]   ;;  %v4699_v57 = vld [vmem:[#allocation2 + $0x130] sm:$0xff]   ;;  %v4700_v58 = vld [vmem:[#allocation2 + $0x178] sm:$0xff]  }
  0x38   :  { %3764 = vmatprep.subr.bf16.mxu1 %v4670_v18  ;;  %v203_v54 = vpack.c.bf16 %v194_v52, %v194_v52  ;;  %v4701_v59 = vld [vmem:[#allocation2 + $0x138] sm:$0xff]   ;;  %v4703_v60 = vld [vmem:[#allocation2 + $0x180] sm:$0xff]   ;;  %v4704_v0 = vld [vmem:[#allocation2 + $0x188] sm:$0xff]  }
  0x39   :  { %3743 = vmatpush3.bf16.msra.mxu0 %v4669_v17  ;;  %v188_v62 = vld [vmem:[%s5563_s0 + $0x18] sm:$0xf]  ;;  %v4705_v1 = vld [vmem:[#allocation2 + $0x190] sm:$0xff]   ;;  %v4707_v3 = vld [vmem:[#allocation2 + $0x1a0] sm:$0xff]  }
  0x3a   :  { %3744 = vmatprep.subr.bf16.mxu0 %v4672_v20  ;;  %v204_v63 = vpack.c.bf16 %v188_v62, %v188_v62  ;;  %v4706_v2 = vld [vmem:[#allocation2 + $0x198] sm:$0xff]   ;;  %v4708_v4 = vld [vmem:[#allocation2 + $0x1a8] sm:$0xff]   ;;  %v4709_v5 = vld [vmem:[#allocation2 + $0x1b0] sm:$0xff]  }
  0x3b   :  { %3765 = vmatpush3.bf16.msra.mxu1 %v4671_v19  ;;  %v4710_v6 = vld [vmem:[#allocation2 + $0x1b8] sm:$0xff]   ;;  %v4711_v7 = vld [vmem:[#allocation2 + $0x1c0] sm:$0xff]   ;;  %v4718_v10 = vld [vmem:[#allocation5 + $0x2c] ss:$20 sps:$4 sm:$0xff]  }
  0x3c   :  { %3766 = vmatprep.subr.bf16.mxu1 %v4674_v22  ;;  %v4712_v8 = vld [vmem:[#allocation5] ss:$20 sps:$4 sm:$0xff]   ;;  %v4714_v9 = vld [vmem:[#allocation5 + $0x4] ss:$20 sps:$4 sm:$0xff]   ;;  %v4716_v11 = vld [vmem:[#allocation5 + $0x28] ss:$20 sps:$4 sm:$0xff]   ;;  %v65_v22 = vlaneseq }
  0x3d   :  { %3745 = vmatpush3.bf16.msra.mxu0 %v4673_v21  ;;  %v4722_v12 = vld [vmem:[#allocation5 + $0x54] ss:$20 sps:$4 sm:$0xff]   ;;  %v4720_v13 = vld [vmem:[#allocation5 + $0x50] ss:$20 sps:$4 sm:$0xff]   ;;  %v4724_v15 = vld [vmem:[#allocation5 + $0x78] ss:$20 sps:$4 sm:$0xff]  }
  0x3e   :  { %3746 = vmatprep.subr.bf16.mxu0 %v4676_v24  ;;  %v4726_v14 = vld [vmem:[#allocation5 + $0x7c] ss:$20 sps:$4 sm:$0xff]   ;;  %v4730_v16 = vld [vmem:[#allocation5 + $0xa4] ss:$20 sps:$4 sm:$0xff]   ;;  %v4728_v17 = vld [vmem:[#allocation5 + $0xa0] ss:$20 sps:$4 sm:$0xff]  }
  0x3f   :  { %3767 = vmatpush3.bf16.msra.mxu1 %v4675_v23  ;;  %v4734_v18 = vld [vmem:[#allocation5 + $0xcc] ss:$20 sps:$4 sm:$0xff]   ;;  %v4732_v19 = vld [vmem:[#allocation5 + $0xc8] ss:$20 sps:$4 sm:$0xff]   ;;  %v4736_v21 = vld [vmem:[#allocation5 + $0xf0] ss:$20 sps:$4 sm:$0xff]  }
  0x40   :  { %3768 = vmatprep.subr.bf16.mxu1 %v4678_v26  ;;  %v4738_v20 = vld [vmem:[#allocation5 + $0xf4] ss:$20 sps:$4 sm:$0xff]   ;;  %v5083_v23 = vshrl.u32 %v65_v22, 7  ;;  %v3520_v24 = vld [vmem:[%s5565_s2] ss:$0 sm:$0xff] }
  0x41   :  { %3747 = vmatpush3.bf16.msra.mxu0 %v4677_v25  ;;  %v3521_v25 = vld [vmem:[%s5565_s2 + $0x1] ss:$0 sm:$0xff] }
  0x42   :  { %3748 = vmatprep.subr.bf16.mxu0 %v4680_v28  ;;  %vm67_vm2 = vcmp.lt.s32.totalorder %v5083_v23, 2  ;;  %v4740_v22 = vld [vmem:[#allocation5 + $0x118] ss:$20 sps:$4 sm:$0xff]  }
  0x43   :  { %3769 = vmatpush3.bf16.msra.mxu1 %v4679_v27  ;;  %v217_v27 = vsel %vm67_vm2, %v3520_v24, %v3521_v25  ;;  %v4743_v24 = vld [vmem:[#allocation5 + $0x120] ss:$20 sps:$4 sm:$0xff]   ;;  %v4975_v25 = vmov 0  }
  0x44   :  { %3770 = vmatprep.subr.bf16.mxu1 %v4682_v30 }
  0x45   :  { %3749 = vmatpush3.bf16.msra.mxu0 %v4681_v29 }
  0x46   :  { %3778 = vmatprep.subr.bf16.mxu0 %v4685_v35 }
  0x47   :  { %3771 = vmatpush3.bf16.msra.mxu1 %v4684_v33 }
  0x48   :  { %4015 = vmatprep.subr.bf16.mxu1 %v4972_v42  ;;  %549 = vmatmul.mubr.bf16.vlgmr.msra.gmra.mrb[0].mxu0 %v198_v34 }
  0x49   :  { %3779 = vmatpush3.bf16.msra.mxu0 %v4687_v39  ;;  %628 = vmatprep.mubr.bf16.mxu0 %v203_v54 }
  0x4a   :  { %589 = vmatmul.mubr.bf16.vlgmr.msra.gmra.mrb[0].mxu1 %v200_v40  ;;  %3780 = vmatprep.subr.bf16.mxu0 %v4688_v41 }
  0x4b   :  { %4031 = vmatprep.mubr.msk.bf16.mxu1 %vm4973_vm0, %v4972_v42  ;;  %4016 = vmatpush3.bf16.msra.mxu1 %v4704_v0 }
  0x4c   :  { %4017 = vmatprep.subr.bf16.mxu1 %v4972_v42 }
  0x4d   :  { %3781 = vmatpush3.bf16.msra.mxu0 %v4689_v44 }
  0x4e   :  { %3782 = vmatprep.subr.bf16.mxu0 %v4690_v45 }
  0x4f   :  { %4018 = vmatpush3.bf16.msra.mxu1 %v4705_v1 }
  0x50   :  { %4019 = vmatprep.subr.bf16.mxu1 %v4972_v42 }
  0x51   :  { %3783 = vmatpush3.bf16.msra.mxu0 %v4691_v46 }
  0x52   :  { %3784 = vmatprep.subr.bf16.mxu0 %v4692_v47 }
  0x53   :  { %4020 = vmatpush3.bf16.msra.mxu1 %v4706_v2 }
  0x54   :  { %4021 = vmatprep.subr.bf16.mxu1 %v4972_v42 }
  0x55   :  { %3785 = vmatpush3.bf16.msra.mxu0 %v4693_v48 }
  0x56   :  { %3786 = vmatprep.subr.bf16.mxu0 %v4694_v49 }
  0x57   :  { %4022 = vmatpush3.bf16.msra.mxu1 %v4707_v3 }
  0x58   :  { %4023 = vmatprep.subr.bf16.mxu1 %v4972_v42 }
  0x59   :  { %3787 = vmatpush3.bf16.msra.mxu0 %v4695_v51 }
  0x5a   :  { %3788 = vmatprep.subr.bf16.mxu0 %v4696_v53 }
  0x5b   :  { %4024 = vmatpush3.bf16.msra.mxu1 %v4708_v4 }
  0x5c   :  { %4025 = vmatprep.subr.bf16.mxu1 %v4972_v42 }
  0x5d   :  { %3789 = vmatpush3.bf16.msra.mxu0 %v4697_v55 }
  0x5e   :  { %3790 = vmatprep.subr.bf16.mxu0 %v4698_v56 }
  0x5f   :  { %4026 = vmatpush3.bf16.msra.mxu1 %v4709_v5 }
  0x60   :  { %4027 = vmatprep.subr.bf16.mxu1 %v4972_v42 }
  0x61   :  { %3791 = vmatpush3.bf16.msra.mxu0 %v4699_v57 }
  0x62   :  { %3792 = vmatprep.subr.bf16.mxu0 %v4700_v58 }
  0x63   :  { %4028 = vmatpush3.bf16.msra.mxu1 %v4710_v6 }
  0x64   :  { %4029 = vmatprep.subr.bf16.mxu1 %v4972_v42 }
  0x65   :  { %3793 = vmatpush3.bf16.msra.mxu0 %v4701_v59 }
  0x66   :  { %4009 = vmatprep.subr.bf16.mxu0 %v4972_v42 }
  0x67   :  { %4030 = vmatpush3.bf16.msra.mxu1 %v4711_v7  ;;  %v4974_v7 = vmov -1.0  }
  0x68   :  { %629 = vmatmul.mubr.bf16.vlgmr.msra.gmra.mrb[4].mxu0 %v202_v61  ;;  %4035 = vmatprep.subr.bf16.mxu1 %v4972_v42 }
  0x69   :  { %4010 = vmatpush3.bf16.msra.mxu0 %v4703_v60  ;;  %4011 = vmatprep.mubr.msk.bf16.mxu0 %vm4973_vm0, %v4972_v42 }
  0x6a   :  { %1028 = vmatprep.subr.bf16.mxu0 %v4714_v9 }
  0x70   :  { %4012 = vmatmul.mubr.msk.bf16.vlgmr.msra.gmra.mrb[8].mxu0 %vm512_vm1, %v204_v63 }
  0x71   :  { %1029 = vmatpush1.bf16.msra.mxu0 %v4712_v8  ;;  %1060 = vmatprep.mubr.bf16.mxu0 %v4975_v25 }
  0x72   :  { %1030 = vmatprep.subr.bf16.mxu0 %v4718_v10 }
  0x75   :  { %1031 = vmatpush1.bf16.msra.mxu0 %v4716_v11 }
  0x76   :  { %1032 = vmatprep.subr.bf16.mxu0 %v4722_v12 }
  0x79   :  { %1033 = vmatpush1.bf16.msra.mxu0 %v4720_v13  ;;  %v4715_v13 = vld [vmem:[#allocation5 + $0x8] ss:$20 sps:$4 sm:$0xff]  }
  0x7a   :  { %1034 = vmatprep.subr.bf16.mxu0 %v4726_v14 }
  0x7d   :  { %1035 = vmatpush1.bf16.msra.mxu0 %v4724_v15  ;;  %v4719_v15 = vld [vmem:[#allocation5 + $0x30] ss:$20 sps:$4 sm:$0xff]  }
  0x7e   :  { %1036 = vmatprep.subr.bf16.mxu0 %v4730_v16  ;;  %v4723_v16 = vld [vmem:[#allocation5 + $0x58] ss:$20 sps:$4 sm:$0xff]  }
  0x81   :  { %1037 = vmatpush1.bf16.msra.mxu0 %v4728_v17  ;;  %v4727_v17 = vld [vmem:[#allocation5 + $0x80] ss:$20 sps:$4 sm:$0xff]  }
  0x82   :  { %1038 = vmatprep.subr.bf16.mxu0 %v4734_v18  ;;  %v4731_v18 = vld [vmem:[#allocation5 + $0xa8] ss:$20 sps:$4 sm:$0xff]  }
  0x85   :  { %1039 = vmatpush1.bf16.msra.mxu0 %v4732_v19  ;;  %v4735_v19 = vld [vmem:[#allocation5 + $0xd0] ss:$20 sps:$4 sm:$0xff]  }
  0x86   :  { %1040 = vmatprep.subr.bf16.mxu0 %v4738_v20  ;;  %v4739_v20 = vld [vmem:[#allocation5 + $0xf8] ss:$20 sps:$4 sm:$0xff]  }
  0x89   :  { %1041 = vmatpush1.bf16.msra.mxu0 %v4736_v21  ;;  %v4742_v21 = vld [vmem:[#allocation5 + $0x11c] ss:$20 sps:$4 sm:$0xff]  }
  0x8a   :  { %1042 = vmatprep.subr.bf16.mxu0 %v4742_v21 }
  0x8d   :  { %1043 = vmatpush1.bf16.msra.mxu0 %v4740_v22 }
 0x11b   :  { %v3750_v26 = vpop.f32.mrb[0].mxu0 }
 0x11c   :  { %v3751_v28 = vpop.f32.mrb[1].mxu0 }
 0x11d   :  { %v3752_v29 = vadd.f32 %v3751_v28, %v3750_v26  ;;  %v3753_v30 = vpop.f32.mrb[2].mxu0  ;;  %v3772_v31 = vpop.f32.mrb[0].mxu1  ;;  %v3572_v26 = vld [vmem:[%s5565_s2 + $0x2] ss:$0 sm:$0xff] }
 0x11e   :  { %v3754_v32 = vpop.f32.mrb[3].mxu0  ;;  %v3773_v33 = vpop.f32.mrb[1].mxu1 }
 0x11f   :  { %v551_v34 = vadd.f32 %v3752_v29, %v217_v27  ;;  %v3774_v35 = vadd.f32 %v3773_v33, %v3772_v31  ;;  %v3775_v36 = vpop.f32.mrb[2].mxu1 }
 0x120   :  { %v3776_v37 = vpop.f32.mrb[3].mxu1 }
 0x121   :  { %v591_v38 = vadd.f32 %v3774_v35, %v551_v34  ;;  %v798_v34 = vld [vmem:[%s5568_s5] sm:$0xff]  ;;  %v799_v35 = vld [vmem:[%s5568_s5 + $0x8] sm:$0xff]  ;;  %v4976_v37 = vmov 0.0|0.0  }
 0x122   :  { %v5127_v36 = vpack.c.bf16 %v799_v35, %v798_v34 }
 0x13b   :  { %v3794_v39 = vpop.f32.mrb[4].mxu0 }
 0x13c   :  { %v3795_v40 = vpop.f32.mrb[5].mxu0 }
 0x13d   :  { %v3796_v41 = vadd.f32 %v3795_v40, %v3794_v39  ;;  %v3797_v43 = vpop.f32.mrb[6].mxu0  ;;  %v801_v39 = vld [vmem:[%s5568_s5 + $0x18] sm:$0xff] }
 0x13e   :  { %v3798_v44 = vpop.f32.mrb[7].mxu0  ;;  %v803_v43 = vld [vmem:[%s5568_s5 + $0x28] sm:$0xff] }
 0x13f   :  { %v631_v45 = vadd.f32 %v3796_v41, %v591_v38  ;;  %v800_v38 = vld [vmem:[%s5568_s5 + $0x10] sm:$0xff]  ;;  %v802_v41 = vld [vmem:[%s5568_s5 + $0x20] sm:$0xff] }
 0x140   :  { %v5138_v40 = vpack.c.bf16 %v801_v39, %v800_v38  ;;  %v5148_v44 = vpack.c.bf16 %v803_v43, %v802_v41 }
 0x143   :  { %v670_v46 = vpop.f32.mrb[8].mxu0 }
 0x144   :  { %v5094_v47 = vadd.f32 %v670_v46, %v631_v45  ;;  %v4013_v48 = vpop.f32.mrb[9].mxu0  ;;  %v804_v45 = vld [vmem:[%s5568_s5 + $0x30] sm:$0xff]  ;;  %v805_v46 = vld [vmem:[%s5568_s5 + $0x38] sm:$0xff] }
 0x145   :  { %v673_v49 = vpop.f32.mrb[10].mxu0  ;;  %v806_v48 = vld [vmem:[%s5568_s5 + $0x40] sm:$0xff] }
 0x146   :  { %v677_v50 = vmul.f32 0.70710677, %v5094_v47  ;;  %v4014_v51 = vpop.f32.mrb[11].mxu0  ;;  %v676_v10 = vmul.f32 0.5, %v5094_v47  ;;  %v807_v49 = vld [vmem:[%s5568_s5 + $0x48] sm:$0xff] }
 0x147   :  { %v808_v51 = vld [vmem:[%s5568_s5 + $0x50] sm:$0xff] }
 0x148   :  { %v680_v52 = vand.u32 2147483647, %v677_v50  ;;  %vm678_vm3 = vcmp.ge.f32.partialorder %v677_v50, 0.0  ;;  %v5168_v50 = vpack.c.bf16 %v807_v49, %v806_v48  ;;  %v4746_v48 = vld [vmem:[#allocation5 + $0x5c] ss:$20 sps:$4 sm:$0xff]  }
 0x149   :  { %v679_v8 = vsel %vm678_vm3, 1.0, %v4974_v7  ;;  %v4748_v49 = vld [vmem:[#allocation5 + $0xac] ss:$20 sps:$4 sm:$0xff]  }
 0x14a   :  { %v681_v53 = vmul.f32 0.3275911, %v680_v52  ;;  %v693_v55 = vsub.f32 0.0, %v680_v52 }
 0x14c   :  { %v682_v54 = vadd.f32 1.0, %v681_v53  ;;  %v694_v57 = vmul.f32 %v693_v55, %v680_v52  ;;  %v809_v52 = vld [vmem:[%s5568_s5 + $0x58] sm:$0xff]  ;;  %v811_v55 = vld [vmem:[%s5568_s5 + $0x68] sm:$0xff] }
 0x14d   :  { %v5178_v53 = vpack.c.bf16 %v809_v52, %v808_v51  ;;  %v4749_v51 = vld [vmem:[#allocation5 + $0xd4] ss:$20 sps:$4 sm:$0xff]   ;;  %v4750_v52 = vld [vmem:[#allocation5 + $0xfc] ss:$20 sps:$4 sm:$0xff]  }
 0x14e   :  { %4864 = vrcp.f32 %v682_v54  ;;  %v695_v60 = vmul.f32 1.442695, %v694_v57  ;;  %v810_v54 = vld [vmem:[%s5568_s5 + $0x60] sm:$0xff]  ;;  %v812_v57 = vld [vmem:[%s5568_s5 + $0x70] sm:$0xff] }
 0x150   :  { %4866 = vpow2.f32 %v695_v60  ;;  %v5203_v60 = vsub.s32 2, %v5083_v23 }
 0x158   :  { %v4865_v56 = vpop.eup %4864 }
 0x159   :  { %v684_v58 = vmul.f32 1.0614054, %v4865_v56 }
 0x15a   :  { %v4867_v4 = vpop.eup %4866 }
 0x15b   :  { %v685_v59 = vadd.f32 -1.4531521, %v684_v58  ;;  %v813_v58 = vld [vmem:[%s5568_s5 + $0x78] sm:$0xff] }
 0x15d   :  { %v686_v61 = vmul.f32 %v4865_v56, %v685_v59  ;;  %v5198_v59 = vpack.c.bf16 %v813_v58, %v812_v57 }
 0x15f   :  { %v687_v62 = vadd.f32 1.4214138, %v686_v61  ;;  %v880_v61 = vld [vmem:[%s5567_s4] sm:$0x7] }
 0x161   :  { %v688_v63 = vmul.f32 %v4865_v56, %v687_v62  ;;  %v5209_v62 = vsub.s32 1, %v5083_v23 }
 0x163   :  { %v689_v0 = vadd.f32 -0.28449672, %v688_v63  ;;  %v896_v63 = vrot.slane %v880_v61, %v5203_v60 }
 0x165   :  { %v690_v1 = vmul.f32 %v4865_v56, %v689_v0  ;;  %v892_v0 = vrot.slane %v880_v61, %v5209_v62 }
 0x167   :  { %v691_v2 = vadd.f32 0.2548296, %v690_v1 }
 0x169   :  { %v692_v3 = vmul.f32 %v4865_v56, %v691_v2  ;;  %v5188_v56 = vpack.c.bf16 %v811_v55, %v810_v54 }
 0x16b   :  { %v697_v5 = vmul.f32 %v4867_v4, %v692_v3 }
 0x16d   :  { %v698_v6 = vsub.f32 1.0, %v697_v5 }
 0x16f   :  { %v699_v9 = vmul.f32 %v698_v6, %v679_v8 }
 0x171   :  { %v700_v11 = vadd.f32 1.0, %v699_v9  ;;  %v5216_v9 = vld [vmem:[%s5570_s7] sm:$0xf] }
 0x173   :  { %v701_v12 = vmul.f32 %v700_v11, %v676_v10 }
 0x175   :  { %v702_v14 = vpack.c.bf16 %v701_v12, %v701_v12  ;;  %v5235_v12 = vsub.s32 0, %v5083_v23 }
 0x177   :  { %4032 = vmatmul.mubr.bf16.vlgmr.msra.gmra.mrb[4].mxu1 %v702_v14 }
 0x178   :  { %4036 = vmatpush3.bf16.msra.mxu1 %v4715_v13  ;;  %4051 = vmatprep.mubr.msk.bf16.mxu1 %vm4973_vm0, %v4972_v42  ;;  %v888_v13 = vrot.slane %v880_v61, %v5235_v12 }
 0x179   :  { %4037 = vmatprep.subr.bf16.mxu1 %v4972_v42 }
 0x17c   :  { %4038 = vmatpush3.bf16.msra.mxu1 %v4719_v15 }
 0x17d   :  { %4039 = vmatprep.subr.bf16.mxu1 %v4972_v42 }
 0x180   :  { %4040 = vmatpush3.bf16.msra.mxu1 %v4723_v16 }
 0x181   :  { %4041 = vmatprep.subr.bf16.mxu1 %v4972_v42 }
 0x184   :  { %4042 = vmatpush3.bf16.msra.mxu1 %v4727_v17 }
 0x185   :  { %4043 = vmatprep.subr.bf16.mxu1 %v4972_v42 }
 0x188   :  { %4044 = vmatpush3.bf16.msra.mxu1 %v4731_v18 }
 0x189   :  { %4045 = vmatprep.subr.bf16.mxu1 %v4972_v42 }
 0x18c   :  { %4046 = vmatpush3.bf16.msra.mxu1 %v4735_v19 }
 0x18d   :  { %4047 = vmatprep.subr.bf16.mxu1 %v4972_v42 }
 0x190   :  { %4048 = vmatpush3.bf16.msra.mxu1 %v4739_v20  ;;  %v5252_v20 = vld [vmem:[%s5569_s6] sm:$0xff] }
 0x191   :  { %4049 = vmatprep.subr.bf16.mxu1 %v4972_v42 }
 0x194   :  { %4050 = vmatpush3.bf16.msra.mxu1 %v4743_v24 }
 0x195   :  { %4484 = vmatprep.subr.bf16.mxu1 %v4976_v37 }
 0x24a   :  { %v791_v27 = vpop.f32.mrb[4].mxu1 }
 0x24b   :  { %v792_v28 = vadd.f32 %v3572_v26, %v791_v27  ;;  %v4033_v29 = vpop.f32.mrb[5].mxu1 }
 0x24c   :  { %v794_v30 = vpop.f32.mrb[6].mxu1 }
 0x24d   :  { %v5114_v31 = vsel %vm67_vm2, %v5094_v47, %v792_v28  ;;  %v4034_v32 = vpop.f32.mrb[7].mxu1  ;;  %v5158_v47 = vpack.c.bf16 %v805_v46, %v804_v45  ;;  %v4744_v45 = vld [vmem:[#allocation5 + $0xc] ss:$20 sps:$4 sm:$0xff]   ;;  %v4745_v46 = vld [vmem:[#allocation5 + $0x34] ss:$20 sps:$4 sm:$0xff]  }
 0x24e   :  { %v883_v33 = vpack.c.bf16 %v5114_v31, %v5114_v31 }
 0x250   :  { %1061 = vmatmul.mubr.bf16.vlgmr.msra.gmra.mrb[12].mxu0 %v883_v33  ;;  %4052 = vmatmul.mubr.bf16.vlgmr.msra.gmra.mrb[8].mxu1 %v883_v33 }
 0x251   :  { %1184 = vmatprep.mubr.f32.mxu0 %v4972_v42  ;;  %4122 = vmatprep.mubr.msk.f32.mxu1 %vm4973_vm0, %v4972_v42 }
 0x252   :  { %4486 = vmatpush3.bf16.msra.mxu1 %v5127_v36 }
 0x253   :  { %4487 = vmatprep.subr.bf16.mxu1 %v4976_v37 }
 0x256   :  { %4489 = vmatpush3.bf16.msra.mxu1 %v5138_v40 }
 0x257   :  { %4490 = vmatprep.subr.bf16.mxu1 %v4976_v37 }
 0x25a   :  { %4492 = vmatpush3.bf16.msra.mxu1 %v5148_v44 }
 0x25b   :  { %4493 = vmatprep.subr.bf16.mxu1 %v4976_v37 }
 0x25e   :  { %4495 = vmatpush3.bf16.msra.mxu1 %v5158_v47 }
 0x25f   :  { %4496 = vmatprep.subr.bf16.mxu1 %v4976_v37 }
 0x262   :  { %4498 = vmatpush3.bf16.msra.mxu1 %v5168_v50 }
 0x263   :  { %4499 = vmatprep.subr.bf16.mxu1 %v4976_v37 }
 0x266   :  { %4501 = vmatpush3.bf16.msra.mxu1 %v5178_v53 }
 0x267   :  { %4502 = vmatprep.subr.bf16.mxu1 %v4976_v37 }
 0x26a   :  { %4504 = vmatpush3.bf16.msra.mxu1 %v5188_v56 }
 0x26b   :  { %4505 = vmatprep.subr.bf16.mxu1 %v4976_v37 }
 0x26e   :  { %4507 = vmatpush3.bf16.msra.mxu1 %v5198_v59 }
 0x26f   :  { %4130 = vmatprep.subr.bf16.mxu1 %v4972_v42 }
 0x323   :  { %v1062_v1 = vpop.f32.mrb[12].mxu0  ;;  %v1103_v2 = vpop.f32.mrb[8].mxu1 }
 0x324   :  { %v1104_v3 = vadd.f32 %v1103_v2, %v896_v63  ;;  %v1064_v4 = vpop.f32.mrb[13].mxu0  ;;  %v4053_v5 = vpop.f32.mrb[9].mxu1  ;;  %v1063_v14 = vadd.f32 %v1062_v1, %v888_v13  ;;  %v4751_v2 = vld [vmem:[#allocation5 + $0x124] ss:$20 sps:$4 sm:$0xff]   ;;  %v4754_v13 = vld [vmem:[#allocation5 + $0x60] ss:$20 sps:$4 sm:$0xff]  }
 0x325   :  { %v1065_v6 = vadd.f32 %v1064_v4, %v892_v0  ;;  %v1066_v7 = vpop.f32.mrb[14].mxu0  ;;  %v1106_v8 = vpop.f32.mrb[10].mxu1 }
 0x326   :  { %v1067_v10 = vpop.f32.mrb[15].mxu0  ;;  %v4054_v11 = vpop.f32.mrb[11].mxu1  ;;  %3605 = vmatprep.subr.msk.mxu0 %vm1113_vm4, %v1104_v3  ;;  %v4752_v7 = vld [vmem:[#allocation5 + $0x10] ss:$20 sps:$4 sm:$0xff]  }
 0x327   :  { %3606 = vmatpush1.msk.msra.mxu0 %vm1113_vm4, %v1065_v6  ;;  %v1191_v15 = vmul.f32 %v1065_v6, %v1063_v14  ;;  %v4753_v10 = vld [vmem:[#allocation5 + $0x38] ss:$20 sps:$4 sm:$0xff]  }
 0x328   :  { %3607 = vmatmul.mubr.msk.f32.vlgmr.msra.gmra.mrb[16].mxu0 %vm1109_vm5, %v5216_v9  ;;  %4460 = vmatprep.subr.bf16.mxu0 %v4976_v37 }
 0x329   :  { %4462 = vmatpush3.bf16.msra.mxu0 %v5127_v36  ;;  %4087 = vmatprep.mubr.msk.f32.mxu0 %vm4973_vm0, %v4972_v42 }
 0x32a   :  { %4463 = vmatprep.subr.bf16.mxu0 %v4976_v37 }
 0x32d   :  { %4465 = vmatpush3.bf16.msra.mxu0 %v5138_v40 }
 0x32e   :  { %4466 = vmatprep.subr.bf16.mxu0 %v4976_v37 }
 0x331   :  { %4468 = vmatpush3.bf16.msra.mxu0 %v5148_v44 }
 0x332   :  { %4469 = vmatprep.subr.bf16.mxu0 %v4976_v37 }
 0x335   :  { %4471 = vmatpush3.bf16.msra.mxu0 %v5158_v47 }
 0x336   :  { %4472 = vmatprep.subr.bf16.mxu0 %v4976_v37 }
 0x339   :  { %4474 = vmatpush3.bf16.msra.mxu0 %v5168_v50 }
 0x33a   :  { %4475 = vmatprep.subr.bf16.mxu0 %v4976_v37 }
 0x33d   :  { %4477 = vmatpush3.bf16.msra.mxu0 %v5178_v53 }
 0x33e   :  { %4478 = vmatprep.subr.bf16.mxu0 %v4976_v37 }
 0x341   :  { %4480 = vmatpush3.bf16.msra.mxu0 %v5188_v56 }
 0x342   :  { %4481 = vmatprep.subr.bf16.mxu0 %v4976_v37 }
 0x345   :  { %4483 = vmatpush3.bf16.msra.mxu0 %v5198_v59 }
 0x346   :  { %4125 = vmatprep.subr.mxu0 %v4972_v42 }
 0x348   :  { %4088 = vmatmul.mubr.f32.vlgmr.msra.gmra.mrb[18].mxu0 %v1191_v15  ;;  %v4756_v15 = vld [vmem:[#allocation5 + $0xb0] ss:$20 sps:$4 sm:$0xff]  }
 0x349   :  { %4127 = vmatprep.mubr.msk.f32.mxu0 %vm4973_vm0, %v4972_v42  ;;  %4126 = vmatpush3.msra.mxu0 %v5252_v20 }
 0x34a   :  { %4150 = vmatprep.subr.bf16.mxu0 %v4972_v42 }
 0x3fb   :  { %v1186_v23 = vpop.f32.mrb[16].mxu0 }
 0x3fc   :  { %v1262_v16 = vmul.f32 %v1186_v23, %v1063_v14  ;;  %v1188_v17 = vpop.f32.mrb[17].mxu0  ;;  %v4755_v14 = vld [vmem:[#allocation5 + $0x88] ss:$20 sps:$4 sm:$0xff]   ;;  %v4757_v23 = vld [vmem:[#allocation5 + $0xd8] ss:$20 sps:$4 sm:$0xff]  }
 0x3fd   :  { %v1412_v30 = vsub.f32 %v1104_v3, %v1188_v17 }
 0x3fe   :  { %4123 = vmatmul.mubr.f32.vlgmr.msra.gmra.mrb[12].mxu1 %v1262_v16 }
 0x3ff   :  { %4146 = vmatprep.mubr.msk.bf16.mxu1 %vm4973_vm0, %v4972_v42  ;;  %4131 = vmatpush3.bf16.msra.mxu1 %v4744_v45 }
 0x400   :  { %4132 = vmatprep.subr.bf16.mxu1 %v4972_v42 }
 0x403   :  { %4133 = vmatpush3.bf16.msra.mxu1 %v4745_v46 }
 0x404   :  { %4134 = vmatprep.subr.bf16.mxu1 %v4972_v42 }
 0x407   :  { %4135 = vmatpush3.bf16.msra.mxu1 %v4746_v48 }
 0x408   :  { %4136 = vmatprep.subr.bf16.mxu1 %v4972_v42 }
 0x41b   :  { %v1258_v18 = vpop.f32.mrb[18].mxu0 }
 0x41c   :  { %v4089_v19 = vpop.f32.mrb[19].mxu0 }
 0x4d1   :  { %v1329_v21 = vpop.f32.mrb[12].mxu1 }
 0x4d2   :  { %v1333_v22 = vsub.f32 %v1329_v21, %v1258_v18  ;;  %v4124_v24 = vpop.f32.mrb[13].mxu1 }
 0x4d4   :  { %v1334_v26 = vmul.f32 1.442695, %v1333_v22 }
 0x4d6   :  { %4868 = vpow2.f32 %v1334_v26  ;;  %v4758_v26 = vld [vmem:[#allocation5 + $0x100] ss:$20 sps:$4 sm:$0xff]  }
 0x4e0   :  { %v4869_v27 = vpop.eup %4868 }
 0x4e1   :  { %v1336_v28 = vadd.f32 1.0, %v4869_v27  ;;  %v4759_v27 = vld [vmem:[#allocation5 + $0x128] ss:$20 sps:$4 sm:$0xff]  }
 0x4e3   :  { %4870 = vrcp.f32 %v1336_v28  ;;  %v3609_v28 = vld [vmem:[%s5567_s4 + $0x3] ss:$0 sm:$0xff] }
 0x4ed   :  { %v4871_v29 = vpop.eup %4870 }
 0x4ee   :  { %4128 = vmatmul.mubr.msk.f32.vlgmr.msra.gmra.mrb[20].mxu0 %vm1338_vm6, %v4871_v29 }
 0x4ef   :  { %4166 = vmatprep.mubr.msk.bf16.mxu0 %vm4973_vm0, %v4972_v42  ;;  %4151 = vmatpush3.bf16.msra.mxu0 %v4752_v7  ;;  %v4778_v7 = vld [vmem:[#allocation5 + $0x1e4] ss:$20 sps:$4 sm:$0xff]  }
 0x4f0   :  { %4152 = vmatprep.subr.bf16.mxu0 %v4972_v42 }
 0x4f3   :  { %4153 = vmatpush3.bf16.msra.mxu0 %v4753_v10  ;;  %v4776_v10 = vld [vmem:[#allocation5 + $0x1e0] ss:$20 sps:$4 sm:$0xff]  }
 0x4f4   :  { %4154 = vmatprep.subr.bf16.mxu0 %v4972_v42 }
 0x4f7   :  { %4155 = vmatpush3.bf16.msra.mxu0 %v4754_v13  ;;  %v4783_v13 = vld [vmem:[#allocation5 + $0x210] ss:$20 sps:$4 sm:$0xff]  }
 0x4f8   :  { %4156 = vmatprep.subr.bf16.mxu0 %v4972_v42 }
 0x4fb   :  { %4157 = vmatpush3.bf16.msra.mxu0 %v4755_v14  ;;  %v4780_v14 = vld [vmem:[#allocation5 + $0x208] ss:$20 sps:$4 sm:$0xff]  }
 0x4fc   :  { %4158 = vmatprep.subr.bf16.mxu0 %v4972_v42 }
 0x4ff   :  { %4159 = vmatpush3.bf16.msra.mxu0 %v4756_v15  ;;  %v4786_v15 = vld [vmem:[#allocation5 + $0x234] ss:$20 sps:$4 sm:$0xff]  }
 0x500   :  { %4160 = vmatprep.subr.bf16.mxu0 %v4972_v42 }
 0x503   :  { %4161 = vmatpush3.bf16.msra.mxu0 %v4757_v23  ;;  %v4787_v23 = vld [vmem:[#allocation5 + $0x238] ss:$20 sps:$4 sm:$0xff]  }
 0x504   :  { %4162 = vmatprep.subr.bf16.mxu0 %v4972_v42 }
 0x507   :  { %4163 = vmatpush3.bf16.msra.mxu0 %v4758_v26  ;;  %v4790_v26 = vld [vmem:[#allocation5 + $0x25c] ss:$20 sps:$4 sm:$0xff]  }
 0x508   :  { %4164 = vmatprep.subr.bf16.mxu0 %v4972_v42 }
 0x50b   :  { %4165 = vmatpush3.bf16.msra.mxu0 %v4759_v27 }
 0x50c   :  { %4170 = vmatprep.subr.bf16.mxu0 %v4972_v42 }
 0x5c1   :  { %v1408_v32 = vpop.f32.mrb[20].mxu0 }
 0x5c2   :  { %v1413_v33 = vmul.f32 %v1412_v30, %v1408_v32  ;;  %v4129_v34 = vpop.f32.mrb[21].mxu0 }
 0x5c4   :  { %v1414_v35 = vadd.f32 %v1413_v33, %v1188_v17 }
 0x5c6   :  { %v5260_v38 = vadd.f32 %v1414_v35, %v5114_v31  ;;  %v4747_v31 = vld [vmem:[#allocation5 + $0x84] ss:$20 sps:$4 sm:$0xff]  }
 0x5c7   :  { %4137 = vmatpush3.bf16.msra.mxu1 %v4747_v31 }
 0x5c8   :  { %v1416_v39 = vsel %vm1113_vm4, %v5260_v38, 0.0  ;;  %v1426_v41 = vmul.f32 %v5260_v38, %v5260_v38  ;;  %4138 = vmatprep.subr.bf16.mxu1 %v4972_v42 }
 0x5c9   :  { %1417 = vadd.xlane.f32.xlu0 %v1416_v39 }
 0x5ca   :  { %v1427_v43 = vsel %vm1113_vm4, %v1426_v41, 0.0  ;;  %v3626_v41 = vld [vmem:[%s5567_s4 + $0x4] ss:$0 sm:$0xff] }
 0x5cb   :  { %4139 = vmatpush3.bf16.msra.mxu1 %v4748_v49 }
 0x5cc   :  { %4140 = vmatprep.subr.bf16.mxu1 %v4972_v42 }
 0x5cd   :  { %1428 = vadd.xlane.f32.xlu0 %v1427_v43 }
 0x5cf   :  { %4141 = vmatpush3.bf16.msra.mxu1 %v4749_v51 }
 0x5d0   :  { %4142 = vmatprep.subr.bf16.mxu1 %v4972_v42 }
 0x5d3   :  { %4143 = vmatpush3.bf16.msra.mxu1 %v4750_v52 }
 0x5d4   :  { %4144 = vmatprep.subr.bf16.mxu1 %v4972_v42 }
 0x5d7   :  { %4145 = vmatpush3.bf16.msra.mxu1 %v4751_v2  ;;  %v4771_v2 = vld [vmem:[#allocation5 + $0x198] ss:$20 sps:$4 sm:$0xff]  }
 0x656   :  { %v1418_v54 = vpop.xlane.xlu0 %1417 }
 0x657   :  { %v1419_v55 = vrot.slane %v1418_v54, 4 }
 0x659   :  { %v1420_v57 = vadd.f32 %v1419_v55, %v1418_v54  ;;  %v4760_v55 = vld [vmem:[#allocation5 + $0x140] ss:$20 sps:$4 sm:$0xff]  }
 0x65a   :  { %v1429_v58 = vpop.xlane.xlu0 %1428 }
 0x65b   :  { %v1421_v61 = vrot.slane %v1420_v57, 2  ;;  %v1430_v63 = vrot.slane %v1429_v58, 4 }
 0x65d   :  { %v1431_v0 = vadd.f32 %v1430_v63, %v1429_v58  ;;  %v1422_v1 = vadd.f32 %v1421_v61, %v1420_v57  ;;  %v4762_v57 = vld [vmem:[#allocation5 + $0x144] ss:$20 sps:$4 sm:$0xff]   ;;  %v4763_v58 = vld [vmem:[#allocation5 + $0x148] ss:$20 sps:$4 sm:$0xff]   ;;  %v4766_v61 = vld [vmem:[#allocation5 + $0x16c] ss:$20 sps:$4 sm:$0xff]  }
 0x65e   :  { %1891 = vmatprep.subr.bf16.mxu1 %v4762_v57  ;;  %v4767_v63 = vld [vmem:[#allocation5 + $0x170] ss:$20 sps:$4 sm:$0xff]  }
 0x65f   :  { %v1432_v3 = vrot.slane %v1431_v0, 2  ;;  %v1423_v4 = vrot.slane %v1422_v1, 1 }
 0x661   :  { %v1424_v5 = vadd.f32 %v1423_v4, %v1422_v1  ;;  %v1433_v6 = vadd.f32 %v1432_v3, %v1431_v0  ;;  %v4764_v0 = vld [vmem:[#allocation5 + $0x168] ss:$20 sps:$4 sm:$0xff]   ;;  %v4768_v3 = vld [vmem:[#allocation5 + $0x190] ss:$20 sps:$4 sm:$0xff]  }
 0x662   :  { %v4770_v1 = vld [vmem:[#allocation5 + $0x194] ss:$20 sps:$4 sm:$0xff]   ;;  %v4774_v4 = vld [vmem:[#allocation5 + $0x1bc] ss:$20 sps:$4 sm:$0xff]  }
 0x663   :  { %4604 = vpush %v1424_v5  ;;  %v1434_v8 = vrot.slane %v1433_v6, 1  ;;  %v4775_v5 = vld [vmem:[#allocation5 + $0x1c0] ss:$20 sps:$4 sm:$0xff]  }
 0x665   :  { %v1435_v11 = vadd.f32 %v1434_v8, %v1433_v6  ;;  %v4772_v6 = vld [vmem:[#allocation5 + $0x1b8] ss:$20 sps:$4 sm:$0xff]   ;;  %v4779_v8 = vld [vmem:[#allocation5 + $0x1e8] ss:$20 sps:$4 sm:$0xff]  }
 0x667   :  { %4606 = vpush %v1435_v11  ;;  %v4782_v11 = vld [vmem:[#allocation5 + $0x20c] ss:$20 sps:$4 sm:$0xff]  }
 0x694   :  { %s4605_s22 = spop %4604 }
 0x695   :  { %s1437_s23 = smul.f32 0.001953125, %s4605_s22 }
 0x697   :  { %s1439_s24 = smul.f32 %s1437_s23, %s1437_s23  ;;  %v1441_v18 = vstv %s1437_s23 }
 0x698   :  { %s4607_s25 = spop %4606  ;;  %v1442_v19 = vsub.f32 %v5260_v38, %v1441_v18 }
 0x699   :  { %s1438_s26 = smul.f32 0.001953125, %s4607_s25 }
 0x69b   :  { %s1440_s0 = ssub.f32 %s1438_s26, %s1439_s24 }
 0x69d   :  { %s1443_s27 = sadd.f32 1e-05, %s1440_s0  ;;  %s4977_s0 = smov [#allocation7]  }
 0x69f   :  { %v1444_v16 = vstv %s1443_s27  ;;  %s3510_s27 = sshll.u32 %s4977_s0, 4  ;;  %s3511_s27 = int_to_ptr.vmem [resolvable:$true] %s3510_s27 }
 0x6a0   :  { %4872 = vrsqrt.f32 %v1444_v16  ;;  %v4784_v16 = vld [vmem:[#allocation5 + $0x230] ss:$20 sps:$4 sm:$0xff]   ;;  %p4943_p3 = scmp.lt.s32.totalorder %s3511_s27, %s3511_s27 }
 0x6aa   :  { %v4873_v17 = vpop.eup %4872 }
 0x6ab   :  { %4608 = vpush %v4873_v17 }
 0x6dc   :  { %s4609_s28 = spop %4608 }
 0x6dd   :  { %v1447_v21 = vstv %s4609_s28  ;;  %s4938_s28 = scalar_lea.vmem %s3511_s27, 64 }
 0x6de   :  { %v1448_v22 = vmul.f32 %v1447_v21, %v1442_v19  ;;  %p4939_p2 = scmp.ne.s32.totalorder %s3511_s27, %s4938_s28  ;;  %p4944_p4 = scmp.lt.s32.totalorder %s4938_s28, %s4938_s28 }
 0x6e0   :  { %v1449_v24 = vpack.c.bf16 %v1448_v22, %v1448_v22  ;;  %p4945_p5 = por %p4944_p4, %p4943_p3 }
 0x6e2   :  { %4147 = vmatmul.mubr.bf16.vlgmr.msra.gmra.mrb[16].mxu1 %v1449_v24  ;;  %p4946_p6 = pnand %p4945_p5, %p4939_p2 }
 0x6e3   :  { %1923 = vmatprep.mubr.bf16.mxu1 %v4975_v25  ;;  %1892 = vmatpush1.bf16.msra.mxu1 %v4760_v55 }
 0x6e4   :  { %1893 = vmatprep.subr.bf16.mxu1 %v4766_v61 }
 0x6e7   :  { %1894 = vmatpush1.bf16.msra.mxu1 %v4764_v0 }
 0x6e8   :  { %1895 = vmatprep.subr.bf16.mxu1 %v4770_v1 }
 0x6eb   :  { %1896 = vmatpush1.bf16.msra.mxu1 %v4768_v3 }
 0x6ec   :  { %1897 = vmatprep.subr.bf16.mxu1 %v4774_v4 }
 0x6ef   :  { %1898 = vmatpush1.bf16.msra.mxu1 %v4772_v6 }
 0x6f0   :  { %1899 = vmatprep.subr.bf16.mxu1 %v4778_v7 }
 0x6f3   :  { %1900 = vmatpush1.bf16.msra.mxu1 %v4776_v10 }
 0x6f4   :  { %1901 = vmatprep.subr.bf16.mxu1 %v4782_v11 }
 0x6f7   :  { %1902 = vmatpush1.bf16.msra.mxu1 %v4780_v14 }
 0x6f8   :  { %1903 = vmatprep.subr.bf16.mxu1 %v4786_v15 }
 0x6fb   :  { %1904 = vmatpush1.bf16.msra.mxu1 %v4784_v16 }
 0x6fc   :  { %1905 = vmatprep.subr.bf16.mxu1 %v4790_v26 }
 0x7b5   :  { %v1538_v29 = vpop.f32.mrb[16].mxu1 }
 0x7b6   :  { %v1539_v30 = vadd.f32 %v3609_v28, %v1538_v29  ;;  %v4148_v32 = vpop.f32.mrb[17].mxu1  ;;  %v4788_v29 = vld [vmem:[#allocation5 + $0x258] ss:$20 sps:$4 sm:$0xff]  }
 0x7b7   :  { %v1541_v33 = vpop.f32.mrb[18].mxu1  ;;  %1906 = vmatpush1.bf16.msra.mxu1 %v4788_v29 }
 0x7b8   :  { %vm1544_vm7 = vcmp.ge.f32.partialorder %v1539_v30, 0.0  ;;  %v1545_v34 = vmul.f32 0.01, %v1539_v30  ;;  %v4149_v35 = vpop.f32.mrb[19].mxu1  ;;  %4532 = vmatprep.subr.bf16.mxu1 %v4976_v37 }
 0x7ba   :  { %v1546_v38 = vsel %vm1544_vm7, %v1539_v30, %v1545_v34  ;;  %v4791_v30 = vld [vmem:[#allocation5 + $0x260] ss:$20 sps:$4 sm:$0xff]  }
 0x7bb   :  { %v1547_v39 = vpack.c.bf16 %v1546_v38, %v1546_v38 }
 0x7bd   :  { %4167 = vmatmul.mubr.bf16.vlgmr.msra.gmra.mrb[24].mxu0 %v1547_v39 }
 0x7be   :  { %4186 = vmatprep.mubr.msk.bf16.mxu0 %vm4973_vm0, %v4972_v42  ;;  %4171 = vmatpush3.bf16.msra.mxu0 %v4763_v58 }
 0x7bf   :  { %4172 = vmatprep.subr.bf16.mxu0 %v4972_v42 }
 0x7c2   :  { %4173 = vmatpush3.bf16.msra.mxu0 %v4767_v63 }
 0x7c3   :  { %4174 = vmatprep.subr.bf16.mxu0 %v4972_v42 }
 0x7c6   :  { %4175 = vmatpush3.bf16.msra.mxu0 %v4771_v2 }
 0x7c7   :  { %4176 = vmatprep.subr.bf16.mxu0 %v4972_v42 }
 0x7ca   :  { %4177 = vmatpush3.bf16.msra.mxu0 %v4775_v5 }
 0x7cb   :  { %4178 = vmatprep.subr.bf16.mxu0 %v4972_v42 }
 0x7ce   :  { %4179 = vmatpush3.bf16.msra.mxu0 %v4779_v8 }
 0x7cf   :  { %4180 = vmatprep.subr.bf16.mxu0 %v4972_v42 }
 0x7d2   :  { %4181 = vmatpush3.bf16.msra.mxu0 %v4783_v13 }
 0x7d3   :  { %4182 = vmatprep.subr.bf16.mxu0 %v4972_v42 }
 0x7d6   :  { %4183 = vmatpush3.bf16.msra.mxu0 %v4787_v23 }
 0x7d7   :  { %4184 = vmatprep.subr.bf16.mxu0 %v4972_v42 }
 0x7da   :  { %4185 = vmatpush3.bf16.msra.mxu0 %v4791_v30 }
 0x890   :  { %v1630_v43 = vpop.f32.mrb[24].mxu0 }
 0x891   :  { %v1636_v45 = vadd.f32 %v1630_v43, %v1448_v22  ;;  %v4168_v46 = vpop.f32.mrb[25].mxu0 }
 0x892   :  { %v1633_v48 = vpop.f32.mrb[26].mxu0 }
 0x893   :  { %v5292_v31 = vadd.f32 %v3626_v41, %v1636_v45  ;;  %v4169_v49 = vpop.f32.mrb[27].mxu0 }
 0x895   :  { %v1644_v51 = vsel %vm1113_vm4, %v5292_v31, 0.0  ;;  %v1654_v52 = vmul.f32 %v5292_v31, %v5292_v31 }
 0x896   :  { %1645 = vadd.xlane.f32.xlu1 %v1644_v51 }
 0x897   :  { %v1655_v54 = vsel %vm1113_vm4, %v1654_v52, 0.0 }
 0x89a   :  { %1656 = vadd.xlane.f32.xlu1 %v1655_v54 }
 0x923   :  { %v1646_v17 = vpop.xlane.xlu1 %1645 }
 0x924   :  { %v1647_v18 = vrot.slane %v1646_v17, 4 }
 0x926   :  { %v1648_v19 = vadd.f32 %v1647_v18, %v1646_v17 }
 0x927   :  { %v1657_v21 = vpop.xlane.xlu1 %1656 }
 0x928   :  { %v1649_v22 = vrot.slane %v1648_v19, 2  ;;  %v1658_v24 = vrot.slane %v1657_v21, 4 }
 0x92a   :  { %v1659_v27 = vadd.f32 %v1658_v24, %v1657_v21  ;;  %v1650_v28 = vadd.f32 %v1649_v22, %v1648_v19 }
 0x92c   :  { %v1660_v32 = vrot.slane %v1659_v27, 2  ;;  %v1651_v33 = vrot.slane %v1650_v28, 1 }
 0x92e   :  { %v1652_v34 = vadd.f32 %v1651_v33, %v1650_v28  ;;  %v1661_v35 = vadd.f32 %v1660_v32, %v1659_v27  ;;  %v4792_v32 = vld [vmem:[#allocation5 + $0x14c] ss:$20 sps:$4 sm:$0xff]   ;;  %v4793_v33 = vld [vmem:[#allocation5 + $0x174] ss:$20 sps:$4 sm:$0xff]  }
 0x930   :  { %4610 = vpush %v1652_v34  ;;  %v1662_v38 = vrot.slane %v1661_v35, 1  ;;  %v4794_v34 = vld [vmem:[#allocation5 + $0x19c] ss:$20 sps:$4 sm:$0xff]  }
 0x932   :  { %v1663_v39 = vadd.f32 %v1662_v38, %v1661_v35  ;;  %v4795_v35 = vld [vmem:[#allocation5 + $0x1c4] ss:$20 sps:$4 sm:$0xff]   ;;  %v4796_v38 = vld [vmem:[#allocation5 + $0x1ec] ss:$20 sps:$4 sm:$0xff]  }
 0x934   :  { %4612 = vpush %v1663_v39  ;;  %v4797_v39 = vld [vmem:[#allocation5 + $0x214] ss:$20 sps:$4 sm:$0xff]  }
 0x961   :  { %s4611_s12 = spop %4610 }
 0x962   :  { %s1665_s13 = smul.f32 0.001953125, %s4611_s12 }
 0x964   :  { %s1667_s15 = smul.f32 %s1665_s13, %s1665_s13  ;;  %v1669_v45 = vstv %s1665_s13 }
 0x965   :  { %s4613_s16 = spop %4612  ;;  %v1670_v46 = vsub.f32 %v5292_v31, %v1669_v45  ;;  %v3627_v31 = vld [vmem:[%s5567_s4 + $0x5] sm:$0x7] }
 0x966   :  { %s1666_s17 = smul.f32 0.001953125, %s4613_s16  ;;  %v1759_v52 = vrot.slane %v3627_v31, %v5203_v60  ;;  %v1755_v54 = vrot.slane %v3627_v31, %v5209_v62 }
 0x968   :  { %s1668_s1 = ssub.f32 %s1666_s17, %s1667_s15 }
 0x96a   :  { %s1671_s14 = sadd.f32 1e-05, %s1668_s1 }
 0x96c   :  { %v1672_v41 = vstv %s1671_s14 }
 0x96d   :  { %4874 = vrsqrt.f32 %v1672_v41  ;;  %v4798_v41 = vld [vmem:[#allocation5 + $0x23c] ss:$20 sps:$4 sm:$0xff]  }
 0x977   :  { %v4875_v43 = vpop.eup %4874 }
 0x978   :  { %4614 = vpush %v4875_v43 }
 0x9a9   :  { %s4615_s18 = spop %4614 }
 0x9aa   :  { %v1675_v48 = vstv %s4615_s18 }
 0x9ab   :  { %v5308_v49 = vmul.f32 %v1675_v48, %v1670_v46 }
 0x9ad   :  { %v1746_v51 = vpack.c.bf16 %v5308_v49, %v5308_v49 }
 0x9af   :  { %1924 = vmatmul.mubr.bf16.vlgmr.msra.gmra.mrb[20].mxu1 %v1746_v51  ;;  %4187 = vmatmul.mubr.bf16.vlgmr.msra.gmra.mrb[28].mxu0 %v1746_v51 }
 0x9b0   :  { %2042 = vmatprep.mubr.f32.mxu0 %v4972_v42  ;;  %4534 = vmatpush3.bf16.msra.mxu1 %v5127_v36 }
 0x9b1   :  { %4535 = vmatprep.subr.bf16.mxu1 %v4976_v37  ;;  %4257 = vmatprep.mubr.msk.f32.mxu1 %vm4973_vm0, %v4972_v42 }
 0x9b4   :  { %4537 = vmatpush3.bf16.msra.mxu1 %v5138_v40 }
 0x9b5   :  { %4538 = vmatprep.subr.bf16.mxu1 %v4976_v37 }
 0x9b8   :  { %4540 = vmatpush3.bf16.msra.mxu1 %v5148_v44 }
 0x9b9   :  { %4541 = vmatprep.subr.bf16.mxu1 %v4976_v37 }
 0x9bc   :  { %4543 = vmatpush3.bf16.msra.mxu1 %v5158_v47 }
 0x9bd   :  { %4544 = vmatprep.subr.bf16.mxu1 %v4976_v37 }
 0x9c0   :  { %4546 = vmatpush3.bf16.msra.mxu1 %v5168_v50 }
 0x9c1   :  { %4547 = vmatprep.subr.bf16.mxu1 %v4976_v37 }
 0x9c4   :  { %4549 = vmatpush3.bf16.msra.mxu1 %v5178_v53 }
 0x9c5   :  { %4550 = vmatprep.subr.bf16.mxu1 %v4976_v37 }
 0x9c8   :  { %4552 = vmatpush3.bf16.msra.mxu1 %v5188_v56 }
 0x9c9   :  { %4553 = vmatprep.subr.bf16.mxu1 %v4976_v37 }
 0x9cc   :  { %4555 = vmatpush3.bf16.msra.mxu1 %v5198_v59 }
 0x9cd   :  { %4285 = vmatprep.subr.bf16.mxu1 %v4972_v42 }
 0xa82   :  { %v1925_v55 = vpop.f32.mrb[20].mxu1  ;;  %v1966_v57 = vpop.f32.mrb[28].mxu0 }
 0xa83   :  { %v1967_v58 = vadd.f32 %v1966_v57, %v1759_v52  ;;  %v1927_v61 = vpop.f32.mrb[21].mxu1  ;;  %v4188_v63 = vpop.f32.mrb[29].mxu0  ;;  %v4799_v52 = vld [vmem:[#allocation5 + $0x264] ss:$20 sps:$4 sm:$0xff]  }
 0xa84   :  { %v1928_v0 = vadd.f32 %v1927_v61, %v1755_v54  ;;  %v1929_v1 = vpop.f32.mrb[22].mxu1  ;;  %v1969_v2 = vpop.f32.mrb[30].mxu0 }
 0xa85   :  { %v1930_v3 = vpop.f32.mrb[23].mxu1  ;;  %v4189_v4 = vpop.f32.mrb[31].mxu0  ;;  %3654 = vmatprep.subr.msk.mxu0 %vm1113_vm4, %v1967_v58  ;;  %v4801_v2 = vld [vmem:[#allocation5 + $0x178] ss:$20 sps:$4 sm:$0xff]  }
 0xa86   :  { %3655 = vmatpush1.msk.msra.mxu0 %vm1113_vm4, %v1928_v0  ;;  %v4802_v3 = vld [vmem:[#allocation5 + $0x1a0] ss:$20 sps:$4 sm:$0xff]   ;;  %v4803_v4 = vld [vmem:[#allocation5 + $0x1c8] ss:$20 sps:$4 sm:$0xff]  }
 0xa87   :  { %3656 = vmatmul.mubr.msk.f32.vlgmr.msra.gmra.mrb[22].mxu0 %vm1109_vm5, %v5216_v9  ;;  %4508 = vmatprep.subr.bf16.mxu0 %v4976_v37  ;;  %v1751_v9 = vrot.slane %v3627_v31, %v5235_v12 }
 0xa88   :  { %4510 = vmatpush3.bf16.msra.mxu0 %v5127_v36  ;;  %4222 = vmatprep.mubr.msk.f32.mxu0 %vm4973_vm0, %v4972_v42 }
 0xa89   :  { %4511 = vmatprep.subr.bf16.mxu0 %v4976_v37  ;;  %v1926_v5 = vadd.f32 %v1925_v55, %v1751_v9  ;;  %v4804_v9 = vld [vmem:[#allocation5 + $0x1f0] ss:$20 sps:$4 sm:$0xff]  }
 0xa8b   :  { %v2049_v6 = vmul.f32 %v1928_v0, %v1926_v5  ;;  %v4800_v0 = vld [vmem:[#allocation5 + $0x150] ss:$20 sps:$4 sm:$0xff]  }
 0xa8c   :  { %4513 = vmatpush3.bf16.msra.mxu0 %v5138_v40 }
 0xa8d   :  { %4514 = vmatprep.subr.bf16.mxu0 %v4976_v37 }
 0xa90   :  { %4516 = vmatpush3.bf16.msra.mxu0 %v5148_v44 }
 0xa91   :  { %4517 = vmatprep.subr.bf16.mxu0 %v4976_v37 }
 0xa94   :  { %4519 = vmatpush3.bf16.msra.mxu0 %v5158_v47 }
 0xa95   :  { %4520 = vmatprep.subr.bf16.mxu0 %v4976_v37 }
 0xa98   :  { %4522 = vmatpush3.bf16.msra.mxu0 %v5168_v50 }
 0xa99   :  { %4523 = vmatprep.subr.bf16.mxu0 %v4976_v37 }
 0xa9c   :  { %4525 = vmatpush3.bf16.msra.mxu0 %v5178_v53 }
 0xa9d   :  { %4526 = vmatprep.subr.bf16.mxu0 %v4976_v37 }
 0xaa0   :  { %4528 = vmatpush3.bf16.msra.mxu0 %v5188_v56 }
 0xaa1   :  { %4529 = vmatprep.subr.bf16.mxu0 %v4976_v37 }
 0xaa4   :  { %4531 = vmatpush3.bf16.msra.mxu0 %v5198_v59 }
 0xaa5   :  { %4260 = vmatprep.subr.mxu0 %v4972_v42 }
 0xaa7   :  { %4223 = vmatmul.mubr.f32.vlgmr.msra.gmra.mrb[32].mxu0 %v2049_v6 }
 0xaa8   :  { %4261 = vmatpush3.msra.mxu0 %v5252_v20  ;;  %4262 = vmatprep.mubr.msk.f32.mxu0 %vm4973_vm0, %v4972_v42 }
 0xaa9   :  { %4265 = vmatprep.subr.bf16.mxu0 %v4972_v42 }
 0xb5a   :  { %v2044_v7 = vpop.f32.mrb[22].mxu0 }
 0xb5b   :  { %v2120_v8 = vmul.f32 %v2044_v7, %v1926_v5  ;;  %v2046_v10 = vpop.f32.mrb[23].mxu0  ;;  %v4805_v5 = vld [vmem:[#allocation5 + $0x218] ss:$20 sps:$4 sm:$0xff]  }
 0xb5c   :  { %v2269_v19 = vsub.f32 %v1967_v58, %v2046_v10 }
 0xb5d   :  { %4258 = vmatmul.mubr.f32.vlgmr.msra.gmra.mrb[14].mxu1 %v2120_v8 }
 0xb5e   :  { %4301 = vmatprep.mubr.msk.bf16.mxu1 %vm4973_vm0, %v4972_v42  ;;  %4286 = vmatpush3.bf16.msra.mxu1 %v4800_v0  ;;  %v4831_v0 = vld [vmem:[#allocation5 + $0x350] ss:$20 sps:$4 sm:$0xff]  }
 0xb5f   :  { %4287 = vmatprep.subr.bf16.mxu1 %v4972_v42 }
 0xb62   :  { %4288 = vmatpush3.bf16.msra.mxu1 %v4801_v2  ;;  %v4834_v2 = vld [vmem:[#allocation5 + $0x374] ss:$20 sps:$4 sm:$0xff]  }
 0xb63   :  { %4289 = vmatprep.subr.bf16.mxu1 %v4972_v42 }
 0xb66   :  { %4290 = vmatpush3.bf16.msra.mxu1 %v4802_v3  ;;  %v4835_v3 = vld [vmem:[#allocation5 + $0x378] ss:$20 sps:$4 sm:$0xff]  }
 0xb67   :  { %4291 = vmatprep.subr.bf16.mxu1 %v4972_v42 }
 0xb6a   :  { %4292 = vmatpush3.bf16.msra.mxu1 %v4803_v4  ;;  %v4832_v4 = vld [vmem:[#allocation5 + $0x370] ss:$20 sps:$4 sm:$0xff]  }
 0xb6b   :  { %4293 = vmatprep.subr.bf16.mxu1 %v4972_v42 }
 0xb6e   :  { %4294 = vmatpush3.bf16.msra.mxu1 %v4804_v9 }
 0xb6f   :  { %4295 = vmatprep.subr.bf16.mxu1 %v4972_v42 }
 0xb72   :  { %4296 = vmatpush3.bf16.msra.mxu1 %v4805_v5 }
 0xb73   :  { %4297 = vmatprep.subr.bf16.mxu1 %v4972_v42 }
 0xb7a   :  { %v2116_v11 = vpop.f32.mrb[32].mxu0 }
 0xb7b   :  { %v4224_v13 = vpop.f32.mrb[33].mxu0 }
 0xc30   :  { %v2187_v14 = vpop.f32.mrb[14].mxu1 }
 0xc31   :  { %v2191_v15 = vsub.f32 %v2187_v14, %v2116_v11  ;;  %v4259_v23 = vpop.f32.mrb[15].mxu1 }
 0xc32   :  { %v4807_v23 = vld [vmem:[#allocation5 + $0x268] ss:$20 sps:$4 sm:$0xff]  }
 0xc33   :  { %v2192_v16 = vmul.f32 1.442695, %v2191_v15  ;;  %v4806_v15 = vld [vmem:[#allocation5 + $0x240] ss:$20 sps:$4 sm:$0xff]  }
 0xc34   :  { %4298 = vmatpush3.bf16.msra.mxu1 %v4806_v15  ;;  %v4839_v15 = vld [vmem:[#allocation5 + $0x3a0] ss:$20 sps:$4 sm:$0xff]  }
 0xc35   :  { %4876 = vpow2.f32 %v2192_v16  ;;  %4299 = vmatprep.subr.bf16.mxu1 %v4972_v42  ;;  %v3658_v16 = vld [vmem:[%s5567_s4 + $0x8] ss:$0 sm:$0xff] }
 0xc38   :  { %4300 = vmatpush3.bf16.msra.mxu1 %v4807_v23 }
 0xc39   :  { %4305 = vmatprep.subr.bf16.mxu1 %v4972_v42 }
 0xc3f   :  { %v4877_v20 = vpop.eup %4876 }
 0xc40   :  { %v2194_v17 = vadd.f32 1.0, %v4877_v20 }
 0xc42   :  { %4878 = vrcp.f32 %v2194_v17 }
 0xc4c   :  { %v4879_v18 = vpop.eup %4878 }
 0xc4d   :  { %4263 = vmatmul.mubr.msk.f32.vlgmr.msra.gmra.mrb[34].mxu0 %vm1338_vm6, %v4879_v18 }
 0xc4e   :  { %4281 = vmatprep.mubr.msk.bf16.mxu0 %vm4973_vm0, %v4972_v42  ;;  %4266 = vmatpush3.bf16.msra.mxu0 %v4792_v32 }
 0xc4f   :  { %4267 = vmatprep.subr.bf16.mxu0 %v4972_v42 }
 0xc52   :  { %4268 = vmatpush3.bf16.msra.mxu0 %v4793_v33 }
 0xc53   :  { %4269 = vmatprep.subr.bf16.mxu0 %v4972_v42 }
 0xc56   :  { %4270 = vmatpush3.bf16.msra.mxu0 %v4794_v34 }
 0xc57   :  { %4271 = vmatprep.subr.bf16.mxu0 %v4972_v42 }
 0xc5a   :  { %4272 = vmatpush3.bf16.msra.mxu0 %v4795_v35 }
 0xc5b   :  { %4273 = vmatprep.subr.bf16.mxu0 %v4972_v42 }
 0xc5e   :  { %4274 = vmatpush3.bf16.msra.mxu0 %v4796_v38 }
 0xc5f   :  { %4275 = vmatprep.subr.bf16.mxu0 %v4972_v42 }
 0xc62   :  { %4276 = vmatpush3.bf16.msra.mxu0 %v4797_v39  ;;  %v4808_v39 = vld [vmem:[#allocation5 + $0x280] ss:$20 sps:$4 sm:$0xff]  }
 0xc63   :  { %4277 = vmatprep.subr.bf16.mxu0 %v4972_v42 }
 0xc66   :  { %4278 = vmatpush3.bf16.msra.mxu0 %v4798_v41  ;;  %v4810_v41 = vld [vmem:[#allocation5 + $0x284] ss:$20 sps:$4 sm:$0xff]  }
 0xc67   :  { %4279 = vmatprep.subr.bf16.mxu0 %v4972_v42 }
 0xc6a   :  { %4280 = vmatpush3.bf16.msra.mxu0 %v4799_v52  ;;  %v4822_v52 = vld [vmem:[#allocation5 + $0x2fc] ss:$20 sps:$4 sm:$0xff]  }
 0xc6b   :  { %2748 = vmatprep.subr.bf16.mxu0 %v4810_v41 }
 0xd20   :  { %v2265_v21 = vpop.f32.mrb[34].mxu0 }
 0xd21   :  { %v2270_v22 = vmul.f32 %v2269_v19, %v2265_v21  ;;  %v4264_v24 = vpop.f32.mrb[35].mxu0 }
 0xd23   :  { %v2271_v26 = vadd.f32 %v2270_v22, %v2046_v10 }
 0xd25   :  { %v5370_v27 = vadd.f32 %v2271_v26, %v5308_v49  ;;  %v3675_v26 = vld [vmem:[%s5567_s4 + $0x9] ss:$0 sm:$0xff] }
 0xd27   :  { %v2273_v28 = vsel %vm1113_vm4, %v5370_v27, 0.0  ;;  %v2283_v29 = vmul.f32 %v5370_v27, %v5370_v27 }
 0xd28   :  { %2274 = vadd.xlane.f32.xlu0 %v2273_v28 }
 0xd29   :  { %v2284_v30 = vsel %vm1113_vm4, %v2283_v29, 0.0 }
 0xd2a   :  { %2285 = vadd.xlane.f32.xlu1 %v2284_v30 }
 0xdb5   :  { %v2275_v43 = vpop.xlane.xlu0 %2274 }
 0xdb6   :  { %v2276_v45 = vrot.slane %v2275_v43, 4 }
 0xdb7   :  { %v2286_v46 = vpop.xlane.xlu1 %2285 }
 0xdb8   :  { %v2277_v48 = vadd.f32 %v2276_v45, %v2275_v43  ;;  %v2287_v49 = vrot.slane %v2286_v46, 4  ;;  %v4811_v43 = vld [vmem:[#allocation5 + $0x288] ss:$20 sps:$4 sm:$0xff]   ;;  %v4814_v45 = vld [vmem:[#allocation5 + $0x2ac] ss:$20 sps:$4 sm:$0xff]  }
 0xdba   :  { %v2278_v51 = vrot.slane %v2277_v48, 2  ;;  %v2288_v31 = vadd.f32 %v2287_v49, %v2286_v46  ;;  %v4815_v46 = vld [vmem:[#allocation5 + $0x2b0] ss:$20 sps:$4 sm:$0xff]   ;;  %v4818_v49 = vld [vmem:[#allocation5 + $0x2d4] ss:$20 sps:$4 sm:$0xff]  }
 0xdbc   :  { %v2289_v54 = vrot.slane %v2288_v31, 2  ;;  %v2279_v55 = vadd.f32 %v2278_v51, %v2277_v48  ;;  %v4812_v48 = vld [vmem:[#allocation5 + $0x2a8] ss:$20 sps:$4 sm:$0xff]   ;;  %v4819_v51 = vld [vmem:[#allocation5 + $0x2d8] ss:$20 sps:$4 sm:$0xff]  }
 0xdbe   :  { %v2280_v57 = vrot.slane %v2279_v55, 1  ;;  %v2290_v58 = vadd.f32 %v2289_v54, %v2288_v31  ;;  %v4816_v31 = vld [vmem:[#allocation5 + $0x2d0] ss:$20 sps:$4 sm:$0xff]   ;;  %v4823_v54 = vld [vmem:[#allocation5 + $0x300] ss:$20 sps:$4 sm:$0xff]  }
 0xdc0   :  { %v2281_v61 = vadd.f32 %v2280_v57, %v2279_v55  ;;  %v2291_v63 = vrot.slane %v2290_v58, 1  ;;  %v4820_v55 = vld [vmem:[#allocation5 + $0x2f8] ss:$20 sps:$4 sm:$0xff]  }
 0xdc1   :  { %v4826_v57 = vld [vmem:[#allocation5 + $0x324] ss:$20 sps:$4 sm:$0xff]  }
 0xdc2   :  { %4616 = vpush %v2281_v61  ;;  %v2292_v1 = vadd.f32 %v2291_v63, %v2290_v58  ;;  %v4827_v58 = vld [vmem:[#allocation5 + $0x328] ss:$20 sps:$4 sm:$0xff]   ;;  %v4824_v61 = vld [vmem:[#allocation5 + $0x320] ss:$20 sps:$4 sm:$0xff]  }
 0xdc3   :  { %v4830_v63 = vld [vmem:[#allocation5 + $0x34c] ss:$20 sps:$4 sm:$0xff]  }
 0xdc4   :  { %4618 = vpush %v2292_v1  ;;  %v4828_v1 = vld [vmem:[#allocation5 + $0x348] ss:$20 sps:$4 sm:$0xff]  }
 0xdf3   :  { %s4617_s3 = spop %4616 }
 0xdf4   :  { %s2294_s20 = smul.f32 0.001953125, %s4617_s3 }
 0xdf5   :  { %s4619_s21 = spop %4618 }
 0xdf6   :  { %s2296_s22 = smul.f32 %s2294_s20, %s2294_s20  ;;  %v2298_v8 = vstv %s2294_s20 }
 0xdf7   :  { %s2295_s23 = smul.f32 0.001953125, %s4619_s21  ;;  %v2299_v10 = vsub.f32 %v5370_v27, %v2298_v8 }
 0xdf9   :  { %s2297_s24 = ssub.f32 %s2295_s23, %s2296_s22 }
 0xdfb   :  { %s2300_s25 = sadd.f32 1e-05, %s2297_s24 }
 0xdfd   :  { %v2301_v6 = vstv %s2300_s25 }
 0xdfe   :  { %4880 = vrsqrt.f32 %v2301_v6 }
 0xe08   :  { %v4881_v7 = vpop.eup %4880 }
 0xe09   :  { %4620 = vpush %v4881_v7 }
 0xe3a   :  { %s4621_s26 = spop %4620 }
 0xe3b   :  { %v2304_v11 = vstv %s4621_s26 }
 0xe3c   :  { %v2305_v13 = vmul.f32 %v2304_v11, %v2299_v10 }
 0xe3e   :  { %v2306_v14 = vpack.c.bf16 %v2305_v13, %v2305_v13 }
 0xe40   :  { %4282 = vmatmul.mubr.bf16.vlgmr.msra.gmra.mrb[36].mxu0 %v2306_v14  ;;  %v4836_v14 = vld [vmem:[#allocation5 + $0x398] ss:$20 sps:$4 sm:$0xff]  }
 0xe41   :  { %2780 = vmatprep.mubr.bf16.mxu0 %v4975_v25  ;;  %2749 = vmatpush1.bf16.msra.mxu0 %v4808_v39 }
 0xe42   :  { %2750 = vmatprep.subr.bf16.mxu0 %v4814_v45 }
 0xe45   :  { %2751 = vmatpush1.bf16.msra.mxu0 %v4812_v48 }
 0xe46   :  { %2752 = vmatprep.subr.bf16.mxu0 %v4818_v49 }
 0xe49   :  { %2753 = vmatpush1.bf16.msra.mxu0 %v4816_v31 }
 0xe4a   :  { %2754 = vmatprep.subr.bf16.mxu0 %v4822_v52 }
 0xe4d   :  { %2755 = vmatpush1.bf16.msra.mxu0 %v4820_v55 }
 0xe4e   :  { %2756 = vmatprep.subr.bf16.mxu0 %v4826_v57 }
 0xe51   :  { %2757 = vmatpush1.bf16.msra.mxu0 %v4824_v61 }
 0xe52   :  { %2758 = vmatprep.subr.bf16.mxu0 %v4830_v63 }
 0xe55   :  { %2759 = vmatpush1.bf16.msra.mxu0 %v4828_v1 }
 0xe56   :  { %2760 = vmatprep.subr.bf16.mxu0 %v4834_v2 }
 0xe59   :  { %2761 = vmatpush1.bf16.msra.mxu0 %v4832_v4 }
 0xf13   :  { %v2395_v20 = vpop.f32.mrb[36].mxu0 }
 0xf14   :  { %v2396_v17 = vadd.f32 %v3658_v16, %v2395_v20  ;;  %v4283_v18 = vpop.f32.mrb[37].mxu0 }
 0xf15   :  { %v2398_v19 = vpop.f32.mrb[38].mxu0 }
 0xf16   :  { %vm2401_vm8 = vcmp.ge.f32.partialorder %v2396_v17, 0.0  ;;  %v2402_v21 = vmul.f32 0.01, %v2396_v17  ;;  %v4284_v22 = vpop.f32.mrb[39].mxu0 }
 0xf18   :  { %v2403_v25 = vsel %vm2401_vm8, %v2396_v17, %v2402_v21 }
 0xf19   :  { %v2404_v24 = vpack.c.bf16 %v2403_v25, %v2403_v25 }
 0xf1b   :  { %4302 = vmatmul.mubr.bf16.vlgmr.msra.gmra.mrb[24].mxu1 %v2404_v24 }
 0xf1c   :  { %4321 = vmatprep.mubr.msk.bf16.mxu1 %vm4973_vm0, %v4972_v42  ;;  %4306 = vmatpush3.bf16.msra.mxu1 %v4811_v43 }
 0xf1d   :  { %4307 = vmatprep.subr.bf16.mxu1 %v4972_v42 }
 0xf20   :  { %4308 = vmatpush3.bf16.msra.mxu1 %v4815_v46 }
 0xf21   :  { %4309 = vmatprep.subr.bf16.mxu1 %v4972_v42 }
 0xf24   :  { %4310 = vmatpush3.bf16.msra.mxu1 %v4819_v51 }
 0xf25   :  { %4311 = vmatprep.subr.bf16.mxu1 %v4972_v42 }
 0xf28   :  { %4312 = vmatpush3.bf16.msra.mxu1 %v4823_v54 }
 0xf29   :  { %4313 = vmatprep.subr.bf16.mxu1 %v4972_v42 }
 0xf2c   :  { %4314 = vmatpush3.bf16.msra.mxu1 %v4827_v58 }
 0xf2d   :  { %4315 = vmatprep.subr.bf16.mxu1 %v4972_v42 }
 0xf30   :  { %4316 = vmatpush3.bf16.msra.mxu1 %v4831_v0 }
 0xf31   :  { %4317 = vmatprep.subr.bf16.mxu1 %v4972_v42 }
 0xf34   :  { %4318 = vmatpush3.bf16.msra.mxu1 %v4835_v3 }
 0xf35   :  { %4319 = vmatprep.subr.bf16.mxu1 %v4972_v42 }
 0xf38   :  { %4320 = vmatpush3.bf16.msra.mxu1 %v4839_v15 }
 0xf39   :  { %4556 = vmatprep.subr.bf16.mxu1 %v4976_v37 }
 0xfee   :  { %v2487_v27 = vpop.f32.mrb[24].mxu1 }
 0xfef   :  { %v2493_v28 = vadd.f32 %v2487_v27, %v2305_v13  ;;  %v4303_v29 = vpop.f32.mrb[25].mxu1  ;;  %v4838_v13 = vld [vmem:[#allocation5 + $0x39c] ss:$20 sps:$4 sm:$0xff]  }
 0xff0   :  { %v2490_v30 = vpop.f32.mrb[26].mxu1  ;;  %2762 = vmatprep.subr.bf16.mxu0 %v4838_v13 }
 0xff1   :  { %v5402_v32 = vadd.f32 %v3675_v26, %v2493_v28  ;;  %v4304_v33 = vpop.f32.mrb[27].mxu1  ;;  %2763 = vmatpush1.bf16.msra.mxu0 %v4836_v14  ;;  %v3676_v30 = vld [vmem:[%s5567_s4 + $0xa] sm:$0x7] }
 0xff2   :  { %v2616_v33 = vrot.slane %v3676_v30, %v5203_v60  ;;  %v4892_v60 = vld [vmem:[%s5570_s7] sm:$0xf] }
 0xff3   :  { %v2501_v34 = vsel %vm1113_vm4, %v5402_v32, 0.0  ;;  %v2511_v35 = vmul.f32 %v5402_v32, %v5402_v32 }
 0xff4   :  { %2502 = vadd.xlane.f32.xlu0 %v2501_v34  ;;  %v2612_v34 = vrot.slane %v3676_v30, %v5209_v62  ;;  %v4893_v62 = vld [vmem:[%s5569_s6] sm:$0xff] }
 0xff5   :  { %v2512_v38 = vsel %vm1113_vm4, %v2511_v35, 0.0 }
 0xff6   :  { %2513 = vadd.xlane.f32.xlu1 %v2512_v38 }
0x1081   :  { %v2503_v9 = vpop.xlane.xlu0 %2502 }
0x1082   :  { %v2504_v5 = vrot.slane %v2503_v9, 4 }
0x1083   :  { %v2514_v6 = vpop.xlane.xlu1 %2513 }
0x1084   :  { %v2505_v7 = vadd.f32 %v2504_v5, %v2503_v9  ;;  %v2515_v8 = vrot.slane %v2514_v6, 4  ;;  %v4840_v9 = vld [vmem:[#allocation5 + $0x28c] ss:$20 sps:$4 sm:$0xff]   ;;  %v4841_v5 = vld [vmem:[#allocation5 + $0x2b4] ss:$20 sps:$4 sm:$0xff]  }
0x1086   :  { %v2506_v10 = vrot.slane %v2505_v7, 2  ;;  %v2516_v11 = vadd.f32 %v2515_v8, %v2514_v6  ;;  %v4842_v6 = vld [vmem:[#allocation5 + $0x2dc] ss:$20 sps:$4 sm:$0xff]   ;;  %v4844_v8 = vld [vmem:[#allocation5 + $0x32c] ss:$20 sps:$4 sm:$0xff]  }
0x1088   :  { %v2517_v23 = vrot.slane %v2516_v11, 2  ;;  %v2507_v16 = vadd.f32 %v2506_v10, %v2505_v7  ;;  %v4843_v7 = vld [vmem:[#allocation5 + $0x304] ss:$20 sps:$4 sm:$0xff]   ;;  %v4845_v10 = vld [vmem:[#allocation5 + $0x354] ss:$20 sps:$4 sm:$0xff]  }
0x108a   :  { %v2508_v20 = vrot.slane %v2507_v16, 1  ;;  %v2518_v17 = vadd.f32 %v2517_v23, %v2516_v11  ;;  %v4846_v11 = vld [vmem:[#allocation5 + $0x37c] ss:$20 sps:$4 sm:$0xff]  }
0x108c   :  { %v2509_v18 = vadd.f32 %v2508_v20, %v2507_v16  ;;  %v2519_v19 = vrot.slane %v2518_v17, 1 }
0x108e   :  { %4622 = vpush %v2509_v18  ;;  %v2520_v21 = vadd.f32 %v2519_v19, %v2518_v17  ;;  %v4847_v18 = vld [vmem:[#allocation5 + $0x3a4] ss:$20 sps:$4 sm:$0xff]  }
0x1090   :  { %4624 = vpush %v2520_v21 }
0x10bf   :  { %s4623_s30 = spop %4622 }
0x10c0   :  { %s2522_s11 = smul.f32 0.001953125, %s4623_s30 }
0x10c1   :  { %s4625_s2 = spop %4624 }
0x10c2   :  { %s2524_s12 = smul.f32 %s2522_s11, %s2522_s11  ;;  %v2526_v24 = vstv %s2522_s11 }
0x10c3   :  { %s2523_s13 = smul.f32 0.001953125, %s4625_s2  ;;  %v2527_v26 = vsub.f32 %v5402_v32, %v2526_v24  ;;  %v2608_v32 = vrot.slane %v3676_v30, %v5235_v12  ;;  %v4850_v30 = vld [vmem:[#allocation5 + $0x2e0] ss:$20 sps:$4 sm:$0xff]  }
0x10c5   :  { %s2525_s15 = ssub.f32 %s2523_s13, %s2524_s12 }
0x10c7   :  { %s2528_s16 = sadd.f32 1e-05, %s2525_s15 }
0x10c9   :  { %v2529_v22 = vstv %s2528_s16 }
0x10ca   :  { %4882 = vrsqrt.f32 %v2529_v22 }
0x10d4   :  { %v4883_v25 = vpop.eup %4882 }
0x10d5   :  { %4626 = vpush %v4883_v25 }
0x1106   :  { %s4627_s17 = spop %4626 }
0x1107   :  { %v2532_v27 = vstv %s4627_s17 }
0x1108   :  { %v5418_v28 = vmul.f32 %v2532_v27, %v2527_v26  ;;  %v4848_v27 = vld [vmem:[#allocation5 + $0x290] ss:$20 sps:$4 sm:$0xff]  }
0x110a   :  { %v2603_v29 = vpack.c.bf16 %v5418_v28, %v5418_v28 }
0x110c   :  { %2781 = vmatmul.mubr.bf16.vlgmr.msra.gmra.mrb[40].mxu0 %v2603_v29  ;;  %4322 = vmatmul.mubr.bf16.vlgmr.msra.gmra.mrb[28].mxu1 %v2603_v29  ;;  %v4849_v29 = vld [vmem:[#allocation5 + $0x2b8] ss:$20 sps:$4 sm:$0xff]  }
0x110d   :  { %4558 = vmatpush3.bf16.msra.mxu1 %v5127_v36  ;;  %2899 = vmatprep.mubr.f32.mxu0 %v4972_v42 }
0x110e   :  { %4559 = vmatprep.subr.bf16.mxu1 %v4976_v37  ;;  %4357 = vmatprep.mubr.msk.f32.mxu1 %vm4973_vm0, %v4972_v42 }
0x1111   :  { %4561 = vmatpush3.bf16.msra.mxu1 %v5138_v40 }
0x1112   :  { %4562 = vmatprep.subr.bf16.mxu1 %v4976_v37 }
0x1115   :  { %4564 = vmatpush3.bf16.msra.mxu1 %v5148_v44 }
0x1116   :  { %4565 = vmatprep.subr.bf16.mxu1 %v4976_v37 }
0x1119   :  { %4567 = vmatpush3.bf16.msra.mxu1 %v5158_v47 }
0x111a   :  { %4568 = vmatprep.subr.bf16.mxu1 %v4976_v37 }
0x111d   :  { %4570 = vmatpush3.bf16.msra.mxu1 %v5168_v50 }
0x111e   :  { %4571 = vmatprep.subr.bf16.mxu1 %v4976_v37 }
0x1121   :  { %4573 = vmatpush3.bf16.msra.mxu1 %v5178_v53 }
0x1122   :  { %4574 = vmatprep.subr.bf16.mxu1 %v4976_v37 }
0x1125   :  { %4576 = vmatpush3.bf16.msra.mxu1 %v5188_v56 }
0x1126   :  { %4577 = vmatprep.subr.bf16.mxu1 %v4976_v37 }
0x1129   :  { %4579 = vmatpush3.bf16.msra.mxu1 %v5198_v59 }
0x112a   :  { %4395 = vmatprep.subr.mxu1 %v4972_v42 }
0x11df   :  { %v2782_v35 = vpop.f32.mrb[40].mxu0  ;;  %v2823_v38 = vpop.f32.mrb[28].mxu1 }
0x11e0   :  { %v2783_v39 = vadd.f32 %v2782_v35, %v2608_v32  ;;  %v2824_v41 = vadd.f32 %v2823_v38, %v2616_v33  ;;  %v2784_v43 = vpop.f32.mrb[41].mxu0  ;;  %v4323_v45 = vpop.f32.mrb[29].mxu1  ;;  %v4851_v32 = vld [vmem:[#allocation5 + $0x308] ss:$20 sps:$4 sm:$0xff]   ;;  %v4852_v33 = vld [vmem:[#allocation5 + $0x330] ss:$20 sps:$4 sm:$0xff]  }
0x11e1   :  { %v2785_v46 = vadd.f32 %v2784_v43, %v2612_v34  ;;  %v2786_v48 = vpop.f32.mrb[42].mxu0  ;;  %v2826_v49 = vpop.f32.mrb[30].mxu1  ;;  %v4853_v34 = vld [vmem:[#allocation5 + $0x358] ss:$20 sps:$4 sm:$0xff]  }
0x11e2   :  { %v2787_v51 = vpop.f32.mrb[43].mxu0  ;;  %v4324_v31 = vpop.f32.mrb[31].mxu1  ;;  %3703 = vmatprep.subr.msk.mxu0 %vm1113_vm4, %v2824_v41  ;;  %v4854_v48 = vld [vmem:[#allocation5 + $0x380] ss:$20 sps:$4 sm:$0xff]   ;;  %v4855_v49 = vld [vmem:[#allocation5 + $0x3a8] ss:$20 sps:$4 sm:$0xff]  }
0x11e3   :  { %v2906_v52 = vmul.f32 %v2785_v46, %v2783_v39  ;;  %3704 = vmatpush1.msk.msra.mxu0 %vm1113_vm4, %v2785_v46  ;;  %v3707_v51 = vld [vmem:[%s5567_s4 + $0xd] ss:$0 sm:$0xff] }
0x11e4   :  { %3705 = vmatmul.mubr.msk.f32.vlgmr.msra.gmra.mrb[44].mxu0 %vm1109_vm5, %v4892_v60  ;;  %4580 = vmatprep.subr.bf16.mxu0 %v4976_v37 }
0x11e5   :  { %4358 = vmatmul.mubr.f32.vlgmr.msra.gmra.mrb[32].mxu1 %v2906_v52  ;;  %4582 = vmatpush3.bf16.msra.mxu0 %v5127_v36 }
0x11e6   :  { %4583 = vmatprep.subr.bf16.mxu0 %v4976_v37  ;;  %4392 = vmatprep.mubr.msk.f32.mxu0 %vm4973_vm0, %v4972_v42 }
0x11e7   :  { %4396 = vmatpush3.msra.mxu1 %v4893_v62  ;;  %4397 = vmatprep.mubr.msk.f32.mxu1 %vm4973_vm0, %v4972_v42 }
0x11e8   :  { %4400 = vmatprep.subr.bf16.mxu1 %v4972_v42 }
0x11e9   :  { %4585 = vmatpush3.bf16.msra.mxu0 %v5138_v40 }
0x11ea   :  { %4586 = vmatprep.subr.bf16.mxu0 %v4976_v37 }
0x11ed   :  { %4588 = vmatpush3.bf16.msra.mxu0 %v5148_v44 }
0x11ee   :  { %4589 = vmatprep.subr.bf16.mxu0 %v4976_v37 }
0x11f1   :  { %4591 = vmatpush3.bf16.msra.mxu0 %v5158_v47 }
0x11f2   :  { %4592 = vmatprep.subr.bf16.mxu0 %v4976_v37 }
0x11f5   :  { %4594 = vmatpush3.bf16.msra.mxu0 %v5168_v50 }
0x11f6   :  { %4595 = vmatprep.subr.bf16.mxu0 %v4976_v37 }
0x11f9   :  { %4597 = vmatpush3.bf16.msra.mxu0 %v5178_v53 }
0x11fa   :  { %4598 = vmatprep.subr.bf16.mxu0 %v4976_v37 }
0x11fd   :  { %4600 = vmatpush3.bf16.msra.mxu0 %v5188_v56 }
0x11fe   :  { %4601 = vmatprep.subr.bf16.mxu0 %v4976_v37 }
0x1201   :  { %4603 = vmatpush3.bf16.msra.mxu0 %v5198_v59 }
0x1202   :  { %4420 = vmatprep.subr.bf16.mxu0 %v4972_v42 }
0x12b7   :  { %v2901_v36 = vpop.f32.mrb[44].mxu0 }
0x12b8   :  { %v2977_v40 = vmul.f32 %v2901_v36, %v2783_v39  ;;  %v2903_v44 = vpop.f32.mrb[45].mxu0  ;;  %v2973_v47 = vpop.f32.mrb[32].mxu1 }
0x12b9   :  { %v4359_v12 = vpop.f32.mrb[33].mxu1  ;;  %v3126_v57 = vsub.f32 %v2824_v41, %v2903_v44 }
0x12ba   :  { %4393 = vmatmul.mubr.f32.vlgmr.msra.gmra.mrb[46].mxu0 %v2977_v40  ;;  %v3724_v12 = vld [vmem:[%s5567_s4 + $0xe] ss:$0 sm:$0xff] }
0x12bb   :  { %4436 = vmatprep.mubr.msk.bf16.mxu0 %vm4973_vm0, %v4972_v42  ;;  %4421 = vmatpush3.bf16.msra.mxu0 %v4848_v27  ;;  %v3725_v27 = vld [vmem:[%s5572_s9] ss:$0 sm:$0xff] }
0x12bc   :  { %4422 = vmatprep.subr.bf16.mxu0 %v4972_v42 }
0x12bf   :  { %4423 = vmatpush3.bf16.msra.mxu0 %v4849_v29 }
0x12c0   :  { %4424 = vmatprep.subr.bf16.mxu0 %v4972_v42 }
0x12c3   :  { %4425 = vmatpush3.bf16.msra.mxu0 %v4850_v30 }
0x12c4   :  { %4426 = vmatprep.subr.bf16.mxu0 %v4972_v42 }
0x12c7   :  { %4427 = vmatpush3.bf16.msra.mxu0 %v4851_v32 }
0x12c8   :  { %4428 = vmatprep.subr.bf16.mxu0 %v4972_v42 }
0x12cb   :  { %4429 = vmatpush3.bf16.msra.mxu0 %v4852_v33 }
0x12cc   :  { %4430 = vmatprep.subr.bf16.mxu0 %v4972_v42 }
0x12cf   :  { %4431 = vmatpush3.bf16.msra.mxu0 %v4853_v34 }
0x12d0   :  { %4432 = vmatprep.subr.bf16.mxu0 %v4972_v42 }
0x12d3   :  { %4433 = vmatpush3.bf16.msra.mxu0 %v4854_v48 }
0x12d4   :  { %4434 = vmatprep.subr.bf16.mxu0 %v4972_v42 }
0x12d7   :  { %4435 = vmatpush3.bf16.msra.mxu0 %v4855_v49 }
0x138d   :  { %v3044_v50 = vpop.f32.mrb[46].mxu0 }
0x138e   :  { %v3048_v53 = vsub.f32 %v3044_v50, %v2973_v47  ;;  %v4394_v54 = vpop.f32.mrb[47].mxu0 }
0x1390   :  { %v3049_v55 = vmul.f32 1.442695, %v3048_v53 }
0x1392   :  { %4884 = vpow2.f32 %v3049_v55 }
0x139c   :  { %v4885_v56 = vpop.eup %4884 }
0x139d   :  { %v3051_v37 = vadd.f32 1.0, %v4885_v56 }
0x139f   :  { %4886 = vrcp.f32 %v3051_v37 }
0x13a9   :  { %v4887_v59 = vpop.eup %4886 }
0x13aa   :  { %4398 = vmatmul.mubr.msk.f32.vlgmr.msra.gmra.mrb[34].mxu1 %vm1338_vm6, %v4887_v59 }
0x13ab   :  { %4416 = vmatprep.mubr.msk.bf16.mxu1 %vm4973_vm0, %v4972_v42  ;;  %4401 = vmatpush3.bf16.msra.mxu1 %v4840_v9 }
0x13ac   :  { %4402 = vmatprep.subr.bf16.mxu1 %v4972_v42 }
0x13af   :  { %4403 = vmatpush3.bf16.msra.mxu1 %v4841_v5 }
0x13b0   :  { %4404 = vmatprep.subr.bf16.mxu1 %v4972_v42 }
0x13b3   :  { %4405 = vmatpush3.bf16.msra.mxu1 %v4842_v6 }
0x13b4   :  { %4406 = vmatprep.subr.bf16.mxu1 %v4972_v42 }
0x13b7   :  { %4407 = vmatpush3.bf16.msra.mxu1 %v4843_v7 }
0x13b8   :  { %4408 = vmatprep.subr.bf16.mxu1 %v4972_v42 }
0x13bb   :  { %4409 = vmatpush3.bf16.msra.mxu1 %v4844_v8 }
0x13bc   :  { %4410 = vmatprep.subr.bf16.mxu1 %v4972_v42 }
0x13bf   :  { %4411 = vmatpush3.bf16.msra.mxu1 %v4845_v10 }
0x13c0   :  { %4412 = vmatprep.subr.bf16.mxu1 %v4972_v42 }
0x13c3   :  { %4413 = vmatpush3.bf16.msra.mxu1 %v4846_v11 }
0x13c4   :  { %4414 = vmatprep.subr.bf16.mxu1 %v4972_v42 }
0x13c7   :  { %4415 = vmatpush3.bf16.msra.mxu1 %v4847_v18 }
0x13c8   :  { %4440 = vmatprep.subr.bf16.mxu1 %v4972_v42 }
0x147d   :  { %v3122_v58 = vpop.f32.mrb[34].mxu1 }
0x147e   :  { %v3127_v61 = vmul.f32 %v3126_v57, %v3122_v58  ;;  %v4399_v63 = vpop.f32.mrb[35].mxu1 }
0x147f   :  { %v4857_v63 = vld [vmem:[%s5571_s8 + $0x8] sm:$0xff]  }
0x1480   :  { %v3128_v0 = vadd.f32 %v3127_v61, %v2903_v44  ;;  %v4856_v61 = vld [vmem:[%s5571_s8] sm:$0xff]  }
0x1482   :  { %v5484_v1 = vadd.f32 %v3128_v0, %v5418_v28  ;;  %v4858_v0 = vld [vmem:[%s5571_s8 + $0x10] sm:$0xff]  }
0x1484   :  { %v3130_v2 = vsel %vm1113_vm4, %v5484_v1, 0.0  ;;  %v3140_v3 = vmul.f32 %v5484_v1, %v5484_v1 }
0x1485   :  { %3131 = vadd.xlane.f32.xlu0 %v3130_v2  ;;  %v4860_v2 = vld [vmem:[%s5571_s8 + $0x20] sm:$0xff]  }
0x1486   :  { %v3141_v4 = vsel %vm1113_vm4, %v3140_v3, 0.0  ;;  %v4861_v3 = vld [vmem:[%s5571_s8 + $0x28] sm:$0xff]  }
0x1487   :  { %3142 = vadd.xlane.f32.xlu1 %v3141_v4  ;;  %v4862_v4 = vld [vmem:[%s5571_s8 + $0x30] sm:$0xff]  }
0x1512   :  { %v3132_v13 = vpop.xlane.xlu0 %3131 }
0x1513   :  { %v3133_v14 = vrot.slane %v3132_v13, 4 }
0x1514   :  { %v3143_v15 = vpop.xlane.xlu1 %3142 }
0x1515   :  { %v3134_v23 = vadd.f32 %v3133_v14, %v3132_v13  ;;  %v3144_v16 = vrot.slane %v3143_v15, 4  ;;  %v4863_v13 = vld [vmem:[%s5571_s8 + $0x38] sm:$0xff]  }
0x1517   :  { %v3135_v20 = vrot.slane %v3134_v23, 2  ;;  %v3145_v17 = vadd.f32 %v3144_v16, %v3143_v15 }
0x1519   :  { %v3146_v19 = vrot.slane %v3145_v17, 2  ;;  %v3136_v21 = vadd.f32 %v3135_v20, %v3134_v23 }
0x151b   :  { %v3137_v22 = vrot.slane %v3136_v21, 1  ;;  %v3147_v25 = vadd.f32 %v3146_v19, %v3145_v17 }
0x151d   :  { %v3138_v24 = vadd.f32 %v3137_v22, %v3136_v21  ;;  %v3148_v26 = vrot.slane %v3147_v25, 1 }
0x151f   :  { %4628 = vpush %v3138_v24  ;;  %v3149_v28 = vadd.f32 %v3148_v26, %v3147_v25 }
0x1521   :  { %4630 = vpush %v3149_v28 }
0x1550   :  { %s4629_s6 = spop %4628 }
0x1551   :  { %s3151_s7 = smul.f32 0.001953125, %s4629_s6 }
0x1552   :  { %s4631_s20 = spop %4630 }
0x1553   :  { %s3153_s21 = smul.f32 %s3151_s7, %s3151_s7  ;;  %v3155_v39 = vstv %s3151_s7 }
0x1554   :  { %s3152_s22 = smul.f32 0.001953125, %s4631_s20  ;;  %v3156_v41 = vsub.f32 %v5484_v1, %v3155_v39  ;;  %v4859_v1 = vld [vmem:[%s5571_s8 + $0x18] sm:$0xff]  }
0x1556   :  { %s3154_s23 = ssub.f32 %s3152_s22, %s3153_s21 }
0x1558   :  { %s3157_s24 = sadd.f32 1e-05, %s3154_s23 }
0x155a   :  { %v3158_v35 = vstv %s3157_s24 }
0x155b   :  { %4888 = vrsqrt.f32 %v3158_v35 }
0x1565   :  { %v4889_v38 = vpop.eup %4888 }
0x1566   :  { %4632 = vpush %v4889_v38 }
0x1597   :  { %s4633_s25 = spop %4632 }
0x1598   :  { %v3161_v43 = vstv %s4633_s25 }
0x1599   :  { %v3162_v45 = vmul.f32 %v3161_v43, %v3156_v41 }
0x159b   :  { %v3163_v46 = vpack.c.bf16 %v3162_v45, %v3162_v45 }
0x159d   :  { %4417 = vmatmul.mubr.bf16.vlgmr.msra.gmra.mrb[36].mxu1 %v3163_v46 }
0x159e   :  { %4456 = vmatprep.mubr.msk.bf16.mxu1 %vm4973_vm0, %v4972_v42  ;;  %4441 = vmatpush3.bf16.msra.mxu1 %v4856_v61 }
0x159f   :  { %4442 = vmatprep.subr.bf16.mxu1 %v4972_v42 }
0x15a2   :  { %4443 = vmatpush3.bf16.msra.mxu1 %v4857_v63 }
0x15a3   :  { %4444 = vmatprep.subr.bf16.mxu1 %v4972_v42 }
0x15a6   :  { %4445 = vmatpush3.bf16.msra.mxu1 %v4858_v0 }
0x15a7   :  { %4446 = vmatprep.subr.bf16.mxu1 %v4972_v42 }
0x15aa   :  { %4447 = vmatpush3.bf16.msra.mxu1 %v4859_v1 }
0x15ab   :  { %4448 = vmatprep.subr.bf16.mxu1 %v4972_v42 }
0x15ae   :  { %4449 = vmatpush3.bf16.msra.mxu1 %v4860_v2 }
0x15af   :  { %4450 = vmatprep.subr.bf16.mxu1 %v4972_v42 }
0x15b2   :  { %4451 = vmatpush3.bf16.msra.mxu1 %v4861_v3 }
0x15b3   :  { %4452 = vmatprep.subr.bf16.mxu1 %v4972_v42 }
0x15b6   :  { %4453 = vmatpush3.bf16.msra.mxu1 %v4862_v4 }
0x15b7   :  { %4454 = vmatprep.subr.bf16.mxu1 %v4972_v42 }
0x15ba   :  { %4455 = vmatpush3.bf16.msra.mxu1 %v4863_v13 }
0x1670   :  { %v3252_v31 = vpop.f32.mrb[36].mxu1 }
0x1671   :  { %v3253_v52 = vadd.f32 %v3707_v51, %v3252_v31  ;;  %v4418_v60 = vpop.f32.mrb[37].mxu1 }
0x1672   :  { %v3255_v62 = vpop.f32.mrb[38].mxu1 }
0x1673   :  { %vm3258_vm9 = vcmp.ge.f32.partialorder %v3253_v52, 0.0  ;;  %v3259_v36 = vmul.f32 0.01, %v3253_v52  ;;  %v4419_v40 = vpop.f32.mrb[39].mxu1 }
0x1675   :  { %v3260_v44 = vsel %vm3258_vm9, %v3253_v52, %v3259_v36 }
0x1676   :  { %v3261_v47 = vpack.c.bf16 %v3260_v44, %v3260_v44 }
0x1678   :  { %4437 = vmatmul.mubr.bf16.vlgmr.msra.gmra.mrb[48].mxu0 %v3261_v47 }
0x174b   :  { %v3344_v50 = vpop.f32.mrb[48].mxu0 }
0x174c   :  { %v3350_v53 = vadd.f32 %v3344_v50, %v3162_v45  ;;  %v4438_v54 = vpop.f32.mrb[49].mxu0 }
0x174d   :  { %v3347_v55 = vpop.f32.mrb[50].mxu0 }
0x174e   :  { %v3357_v56 = vadd.f32 %v3724_v12, %v3350_v53  ;;  %v4439_v37 = vpop.f32.mrb[51].mxu0 }
0x1750   :  { %v3358_v59 = vsel %vm1113_vm4, %v3357_v56, 0.0  ;;  %v3368_v57 = vmul.f32 %v3357_v56, %v3357_v56 }
0x1751   :  { %3359 = vadd.xlane.f32.xlu0 %v3358_v59 }
0x1752   :  { %v3369_v58 = vsel %vm1113_vm4, %v3368_v57, 0.0 }
0x1753   :  { %3370 = vadd.xlane.f32.xlu1 %v3369_v58 }
0x17de   :  { %v3360_v9 = vpop.xlane.xlu0 %3359 }
0x17df   :  { %v3361_v5 = vrot.slane %v3360_v9, 4 }
0x17e0   :  { %v3371_v6 = vpop.xlane.xlu1 %3370 }
0x17e1   :  { %v3362_v7 = vadd.f32 %v3361_v5, %v3360_v9  ;;  %v3372_v8 = vrot.slane %v3371_v6, 4 }
0x17e3   :  { %v3363_v10 = vrot.slane %v3362_v7, 2  ;;  %v3373_v11 = vadd.f32 %v3372_v8, %v3371_v6 }
0x17e5   :  { %v3364_v14 = vadd.f32 %v3363_v10, %v3362_v7  ;;  %v3374_v15 = vrot.slane %v3373_v11, 2 }
0x17e7   :  { %v3375_v23 = vadd.f32 %v3374_v15, %v3373_v11  ;;  %v3365_v16 = vrot.slane %v3364_v14, 1 }
0x17e9   :  { %v3366_v20 = vadd.f32 %v3365_v16, %v3364_v14  ;;  %v3376_v17 = vrot.slane %v3375_v23, 1 }
0x17eb   :  { %4634 = vpush %v3366_v20  ;;  %v3377_v42 = vadd.f32 %v3376_v17, %v3375_v23 }
0x17ed   :  { %4636 = vpush %v3377_v42 }
0x181c   :  { %s4635_s6 = spop %4634 }
0x181d   :  { %s3379_s7 = smul.f32 0.001953125, %s4635_s6 }
0x181e   :  { %s4637_s20 = spop %4636 }
0x181f   :  { %s3381_s21 = smul.f32 %s3379_s7, %s3379_s7  ;;  %v3383_v21 = vstv %s3379_s7 }
0x1820   :  { %s3380_s22 = smul.f32 0.001953125, %s4637_s20  ;;  %v3384_v22 = vsub.f32 %v3357_v56, %v3383_v21 }
0x1822   :  { %s3382_s23 = ssub.f32 %s3380_s22, %s3381_s21 }
0x1824   :  { %s3385_s24 = sadd.f32 1e-05, %s3382_s23 }
0x1826   :  { %v3386_v18 = vstv %s3385_s24 }
0x1827   :  { %4890 = vrsqrt.f32 %v3386_v18 }
0x1831   :  { %v4891_v19 = vpop.eup %4890 }
0x1832   :  { %4638 = vpush %v4891_v19 }
0x1863   :  { %s4639_s8 = spop %4638 }
0x1864   :  { %v3389_v25 = vstv %s4639_s8 }
0x1865   :  { %v3390_v24 = vmul.f32 %v3389_v25, %v3384_v22 }
0x1867   :  { %v3407_v26 = vpack.c.bf16 %v3390_v24, %v3390_v24 }
0x1869   :  { %4457 = vmatmul.mubr.bf16.vlgmr.msra.gmra.mrb[40].mxu1 %v3407_v26 }
0x193c   :  { %v3497_v28 = vpop.f32.mrb[40].mxu1 }
0x193d   :  { %v3498_v29 = vadd.f32 %v3725_v27, %v3497_v28  ;;  %v4458_v30 = vpop.f32.mrb[41].mxu1 }
0x193e   :  { %v3500_v32 = vpop.f32.mrb[42].mxu1 }
0x193f   :  { %3503 = vst [vmem:[#allocation7] sm:$0xf] %v3498_v29  ;;  %v4459_v33 = vpop.f32.mrb[43].mxu1 }
0x1940   :  { %4949 = shalt.err (!%p4946_p6)
}
0x1941   :  { %s4950_s9 = scalar_lea.hbm %s5573_s10, 64 }
0x1942   :  { %p4951_p7 = scmp.ne.s32.totalorder %s5573_s10, %s4950_s9  ;;  %p4954_p8 = scmp.lt.u32.totalorder %s4950_s9, %s5573_s10 }
0x1944   :  { %p4956_p9 = pnand %p4954_p8, %p4951_p7 }
0x1946   :  { %4959 = shalt.err (!%p4956_p9)
}
0x1947   :  { %3513 = dma.vmem_to_hbm [thread:$0]  %s3511_s27, 64, %s5573_s10, [#allocation4]  }
0x1948   :  { %4964 = dma.done.wait [#allocation4], 64  }
0x1949   :  { %4965 = vsyncadd [#allocation4], 4294967232 }
0x194a   :  { %3517 = vsyncpa [#allocation3], 1 }
0x194b   :  { %3518 = vsyncpa [#allocation6], 1 }
0x194c   :  { %3519 = vsyncpa [#allocation4], 1 }

</bundles_post_ra>
